<compile_context>
chip_gen: v6e
topology: v6e:2x2x1
jax: 0.10.0
libtpu: 0.0.40
codegen_flags: <defaults>
</compile_context>

<pallas_src>
import functools

import jax
import jax.numpy as jnp
import numpy as np
from jax.experimental import pallas as pl
from jax.experimental.pallas import tpu as pltpu


def _ceil_to(a, b):
    return -(-a // b) * b


def _vmem_capacity_bytes():
    """Physical VMEM per TensorCore (64 MiB fallback == v7x, the smallest)."""
    try:
        info = pltpu.get_tpu_info()
        for attr in ("vmem_capacity_bytes", "vmem_bytes", "vmem_size_bytes"):
            v = getattr(info, attr, None)
            if v:
                return int(v)
    except Exception:
        pass
    return 64 * 1024 * 1024


# ---------------------------------------------------------------------------
# Kernels
# ---------------------------------------------------------------------------
def _make_sel_ok(s, w_in, wo, pool_mode):
    """Lane mask guarding the compaction matmul (also handles the W tail)."""
    lane = jax.lax.broadcasted_iota(jnp.int32, (1, w_in), 1)
    if pool_mode == "max":
        # only window-start lanes survive (guards 0*inf -> nan in the matmul)
        return ((lane % s) == 0) & (lane < wo * s)
    return lane < wo * s


def _pooled_row(x_ref, smat, sel_ok, t, *, s, w_in, pool_mode, inv_win):
    """Pool one tile-local output row.  Returns (Cin, Wo) float32."""
    if pool_mode == "max":
        # H-direction window reduce: s single-row loads + VPU max (exact).
        ph = x_ref[:, t * s, :]
        for kh in range(1, s):
            ph = jnp.maximum(ph, x_ref[:, t * s + kh, :])
        # W-direction window reduce: lane rolls + max; result valid at lanes
        # ow*s (wrap-around never lands on a selected lane).
        red = ph
        for kw in range(1, s):
            red = jnp.maximum(red, pltpu.roll(ph, w_in - kw, 1))
        red = jnp.where(sel_ok, red, jnp.zeros_like(red))
    else:  # avg: accumulate the H direction in f32
        ph = x_ref[:, t * s, :].astype(jnp.float32)
        for kh in range(1, s):
            ph = ph + x_ref[:, t * s + kh, :].astype(jnp.float32)
        red = jnp.where(sel_ok, ph, jnp.zeros_like(ph))
    # Lane compaction (and, for avg, the W-window sum) as one MXU matmul
    # against the static 0/1 matrix; f32 accumulation.
    pooled = jnp.dot(red.astype(smat.dtype), smat,
                     preferred_element_type=jnp.float32)      # (Cin, Wo)
    if pool_mode == "avg":
        pooled = pooled * inv_win
    return pooled


def _pool_kernel(x_ref, s_ref, o_ref, *, th, s, w_in, wo, pool_mode, inv_win):
    """Pooling only.  x_ref: (Cin, th*s, W) -> o_ref: (Cin, th*Wo)."""
    smat = s_ref[...]
    sel_ok = _make_sel_ok(s, w_in, wo, pool_mode)
    for t in range(th):
        pooled = _pooled_row(x_ref, smat, sel_ok, t, s=s, w_in=w_in,
                             pool_mode=pool_mode, inv_win=inv_win)
        o_ref[:, pl.ds(t * wo, wo)] = pooled.astype(o_ref.dtype)


def _pool_conv_kernel(x_ref, s_ref, w_ref, b_ref, o_ref, *, th, s, w_in, wo,
                      pool_mode, inv_win):
    """Pooling + 1x1 conv.  x_ref: (Cin, th*s, W) -> o_ref: (Cout, th*Wo)."""
    smat = s_ref[...]
    wmat = w_ref[...]
    bvec = b_ref[...]                                # (Cout, 1) float32
    sel_ok = _make_sel_ok(s, w_in, wo, pool_mode)
    for t in range(th):
        pooled = _pooled_row(x_ref, smat, sel_ok, t, s=s, w_in=w_in,
                             pool_mode=pool_mode, inv_win=inv_win)
        out_t = jnp.dot(wmat, pooled.astype(wmat.dtype),
                        preferred_element_type=jnp.float32) + bvec
        o_ref[:, pl.ds(t * wo, wo)] = out_t.astype(o_ref.dtype)


# ---------------------------------------------------------------------------
# Tiling
# ---------------------------------------------------------------------------
def _pick_tile_h(n, ho, wo, cin, cout, s, w_in, in_isz, c_isz, budget):
    """Pick TH (output rows per grid step) + return its VMEM estimate."""
    lanes_w = _ceil_to(w_in, 128)

    def est(d):
        lanes_o = _ceil_to(d * wo, 128)
        in_b = 2 * cin * d * s * lanes_w * in_isz            # double-buffered
        out_b = 2 * _ceil_to(cout, 8) * lanes_o * in_isz
        tmp_b = 8 * _ceil_to(max(cin, cout), 8) * lanes_w * 4  # live values
        cst_b = 2 * (_ceil_to(w_in, 8) * _ceil_to(wo, 128) * c_isz
                     + _ceil_to(cout, 8) * _ceil_to(cin, 128) * c_isz
                     + 8 * 128 * 4)
        return in_b + out_b + tmp_b + cst_b

    cands = sorted(
        d for d in range(1, ho + 1)
        if ho % d == 0
        and ((d * s) % 8 == 0 or d == ho)        # input block sublane rule
        and ((d * wo) % 128 == 0 or d == ho))    # lane-dense output blocks
    pref = [d for d in cands if d <= 64] or cands     # bound the unrolled loop
    fit = [d for d in pref if est(d) <= budget]
    th = max(fit) if fit else min(pref)
    # v7x has 2 TensorCores: make sure the parallel grid has >= 2 steps.
    if n * (ho // th) < 2:
        alt = [d for d in cands if ho // d >= 2]
        if alt:
            alt_fit = [d for d in alt if est(d) <= budget]
            th = max(alt_fit) if alt_fit else max(alt)
    return th, est(th)


# ---------------------------------------------------------------------------
# Wrapper
# ---------------------------------------------------------------------------
def pool2d(x, *, stride=2, pool_mode="max", weight=None, bias=None):
    """Pool2d forward.

    x      : (N, Cin, H, W) NCHW input (like PyTorch).
    weight : optional (Cout, Cin) 1x1-conv weight (used when Cin != Cout).
    bias   : optional (Cout,) 1x1-conv bias.
    """
    assert pool_mode in ("max", "avg")
    n, cin, h, w_in = x.shape
    s = int(stride)
    ho, wo = h // s, w_in // s
    assert ho >= 1 and wo >= 1, "input smaller than the pooling window"
    win = s * s
    # PyTorch {Max,Avg}Pool2d floor-truncate non-divisible spatial dims.
    if ho * s != h:
        x = x[:, :, : ho * s, :]          # rare; small HBM copy only then
    cout = cin if weight is None else int(weight.shape[0])

    in_isz = jnp.dtype(x.dtype).itemsize
    cdtype = jnp.bfloat16 if x.dtype == jnp.bfloat16 else jnp.float32
    c_isz = jnp.dtype(cdtype).itemsize

    cap = _vmem_capacity_bytes()
    vmem_limit = int(cap * 3 // 4)        # ~48 MiB on v7x, ~96 MiB on v5e/v6e
    budget = int(vmem_limit * 0.55)
    th, th_bytes = _pick_tile_h(n, ho, wo, cin, cout, s, w_in,
                                in_isz, c_isz, budget)
    vmem_limit = max(vmem_limit, min(cap, int(th_bytes * 13 // 10)))
    t_tiles = ho // th

    # Static (W, Wo) window matrix: lane selection (max) / membership (avg).
    wi = np.arange(w_in)[:, None]
    owi = np.arange(wo)[None, :]
    if pool_mode == "max":
        sel = wi == owi * s
    else:
        sel = (wi >= owi * s) & (wi < owi * s + s)
    smat = jnp.asarray(sel.astype(np.float32), dtype=cdtype)

    x_spec = pl.BlockSpec((None, cin, th * s, w_in), lambda i, t: (i, 0, t, 0))
    s_spec = pl.BlockSpec((w_in, wo), lambda i, t: (0, 0))
    o_spec = pl.BlockSpec((None, cout, th * wo), lambda i, t: (i, 0, t))
    out_shape = jax.ShapeDtypeStruct((n, cout, ho * wo), x.dtype)

    compiler_params = pltpu.CompilerParams(
        dimension_semantics=("parallel", "parallel"),
        vmem_limit_bytes=vmem_limit)

    flops = 2 * n * cin * ho * w_in * wo          # pooling/compaction matmul
    bytes_accessed = (x.size * in_isz + n * cout * ho * wo * in_isz
                      + smat.size * c_isz)
    if weight is not None:
        flops += 2 * n * cout * cin * ho * wo     # 1x1 conv matmul
        bytes_accessed += cout * cin * c_isz + cout * 4
    cost = pl.CostEstimate(flops=int(flops), transcendentals=0,
                           bytes_accessed=int(bytes_accessed))

    common = dict(th=th, s=s, w_in=w_in, wo=wo, pool_mode=pool_mode,
                  inv_win=1.0 / win)

    if weight is None:
        kernel = functools.partial(_pool_kernel, **common)
        out_flat = pl.pallas_call(
            kernel,
            out_shape=out_shape,
            grid=(n, t_tiles),
            in_specs=[x_spec, s_spec],
            out_specs=o_spec,
            compiler_params=compiler_params,
            cost_estimate=cost,
        )(x, smat)
    else:
        wmat = weight.astype(cdtype)              # bf16 MXU path for bf16 nets
        bvec = (jnp.zeros((cout,), jnp.float32) if bias is None
                else bias.astype(jnp.float32)).reshape(cout, 1)
        w_spec = pl.BlockSpec((cout, cin), lambda i, t: (0, 0))
        b_spec = pl.BlockSpec((cout, 1), lambda i, t: (0, 0))
        kernel = functools.partial(_pool_conv_kernel, **common)
        out_flat = pl.pallas_call(
            kernel,
            out_shape=out_shape,
            grid=(n, t_tiles),
            in_specs=[x_spec, s_spec, w_spec, b_spec],
            out_specs=o_spec,
            compiler_params=compiler_params,
            cost_estimate=cost,
        )(x, smat, wmat, bvec)

    # (N, Cout, Ho*Wo) -> (N, Cout, Ho, Wo): metadata-only, no HBM relayout.
    return out_flat.reshape(n, cout, ho, wo)


# ---------------------------------------------------------------------------
# Reference (pure jnp) for verification
# ---------------------------------------------------------------------------
def _ref_pool2d(x, *, stride, pool_mode, weight=None, bias=None):
    n, c, h, w = x.shape
    s = stride
    ho, wo = h // s, w // s
    xr = x[:, :, : ho * s, : wo * s].reshape(n, c, ho, s, wo, s)
    pooled = xr.max(axis=(3, 5)) if pool_mode == "max" else xr.mean(axis=(3, 5))
    if weight is None:
        return pooled
    out = jnp.einsum("oc,nchw->nohw", weight, pooled)
    if bias is not None:
        out = out + bias.reshape(1, -1, 1, 1)
    return out


# ---------------------------------------------------------------------------
# Main
# ---------------------------------------------------------------------------
if __name__ == "__main__":
    key = jax.random.PRNGKey(0)
    kx, kw, kb = jax.random.split(key, 3)

    # Case 1: in_channels != out_channels -> MaxPool(stride=2) + 1x1 Conv2d
    N, CIN, COUT, H, W, STRIDE = 2, 4, 8, 16, 16, 2
    x = jax.random.normal(kx, (N, CIN, H, W), dtype=jnp.float32)
    # Deterministic Conv2d-style init: U(-k, k), k = 1/sqrt(Cin * 1 * 1)
    k = 1.0 / jnp.sqrt(jnp.float32(CIN))
    conv_w = jax.random.uniform(kw, (COUT, CIN), jnp.float32, -k, k)
    conv_b = jax.random.uniform(kb, (COUT,), jnp.float32, -k, k)

    out = jax.block_until_ready(
        pool2d(x, stride=STRIDE, pool_mode="max", weight=conv_w, bias=conv_b))
    ref = _ref_pool2d(x, stride=STRIDE, pool_mode="max",
                      weight=conv_w, bias=conv_b)
    assert out.shape == (N, COUT, H // STRIDE, W // STRIDE)
    assert jnp.allclose(out, ref, atol=1e-5, rtol=1e-5)

    # Case 2: docstring example — AvgPool, in_channels == out_channels
    x2 = jnp.arange(16, dtype=jnp.float32).reshape(1, 1, 4, 4)
    out2 = jax.block_until_ready(pool2d(x2, stride=2, pool_mode="avg"))
    expected2 = jnp.array([[[[2.5, 4.5], [10.5, 12.5]]]], dtype=jnp.float32)
    assert out2.shape == (1, 1, 2, 2)
    assert jnp.allclose(out2, expected2, atol=1e-6)

    # Case 3: MaxPool, no conv
    out3 = jax.block_until_ready(pool2d(x, stride=STRIDE, pool_mode="max"))
    assert jnp.allclose(out3, _ref_pool2d(x, stride=STRIDE, pool_mode="max"),
                        atol=1e-6)

    # Case 4: AvgPool + 1x1 conv (exercises the f32 avg accumulation path)
    out4 = jax.block_until_ready(
        pool2d(x, stride=STRIDE, pool_mode="avg", weight=conv_w, bias=conv_b))
    ref4 = _ref_pool2d(x, stride=STRIDE, pool_mode="avg",
                       weight=conv_w, bias=conv_b)
    assert jnp.allclose(out4, ref4, atol=1e-5, rtol=1e-5)

    print("KERNEL_OK")
</pallas_src>

<mosaic_0001>
module attributes {stable_mosaic.version = 11 : i64} {
  func.func @_pool_conv_kernel(%arg0: i32, %arg1: i32, %arg2: memref<1x4x16x16xf32, #tpu.memory_space<vmem>>, %arg3: memref<16x8xf32, #tpu.memory_space<vmem>>, %arg4: memref<8x4xf32, #tpu.memory_space<vmem>>, %arg5: memref<8x1xf32, #tpu.memory_space<vmem>>, %arg6: memref<1x8x64xf32, #tpu.memory_space<vmem>>) attributes {dimension_semantics = [#tpu.dimension_semantics<parallel>, #tpu.dimension_semantics<parallel>], iteration_bounds = array<i64: 2, 1>, scalar_prefetch = 0 : i64, scratch_operands = 0 : i64, tpu.core_type = #tpu.core_type<tc>, window_params = [{transform_indices = @transform_0, window_bounds = array<i64: 1, 4, 16, 16>}, {pipeline_mode = #tpu.pipeline_mode<synchronous>, transform_indices = @transform_1, window_bounds = array<i64: 16, 8>}, {pipeline_mode = #tpu.pipeline_mode<synchronous>, transform_indices = @transform_2, window_bounds = array<i64: 8, 4>}, {pipeline_mode = #tpu.pipeline_mode<synchronous>, transform_indices = @transform_3, window_bounds = array<i64: 8, 1>}, {transform_indices = @transform_4, window_bounds = array<i64: 1, 8, 64>}]} {
    %c0 = arith.constant 0 : index
    %c0_0 = arith.constant 0 : index
    %0 = vector.load %arg3[%c0, %c0_0] : memref<16x8xf32, #tpu.memory_space<vmem>>, vector<16x8xf32>
    %c0_1 = arith.constant 0 : index
    %c0_2 = arith.constant 0 : index
    %1 = vector.load %arg4[%c0_1, %c0_2] : memref<8x4xf32, #tpu.memory_space<vmem>>, vector<8x4xf32>
    %c0_3 = arith.constant 0 : index
    %c0_4 = arith.constant 0 : index
    %2 = vector.load %arg5[%c0_3, %c0_4] : memref<8x1xf32, #tpu.memory_space<vmem>>, vector<8x1xf32>
    %3 = tpu.iota {dimensions = array<i32: 1>} : vector<1x16xi32>
    %c2_i32 = arith.constant 2 : i32
    %c0_i32 = arith.constant 0 : i32
    %4 = arith.cmpi eq, %c2_i32, %c0_i32 : i32
    %c1_i32 = arith.constant 1 : i32
    %5 = arith.select %4, %c1_i32, %c2_i32 : i32
    %6 = vector.broadcast %5 : i32 to vector<1x16xi32>
    %7 = arith.remsi %3, %6 : vector<1x16xi32>
    %c0_i32_5 = arith.constant 0 : i32
    %8 = vector.broadcast %c0_i32_5 : i32 to vector<1x16xi32>
    %9 = arith.cmpi ne, %7, %8 : vector<1x16xi32>
    %c0_i32_6 = arith.constant 0 : i32
    %10 = vector.broadcast %c0_i32_6 : i32 to vector<1x16xi32>
    %11 = arith.cmpi slt, %7, %10 : vector<1x16xi32>
    %c0_i32_7 = arith.constant 0 : i32
    %12 = arith.cmpi slt, %5, %c0_i32_7 : i32
    %13 = vector.broadcast %12 : i1 to vector<1x16xi1>
    %14 = vector.broadcast %13 : vector<1x16xi1> to vector<1x16xi1>
    %15 = arith.xori %11, %14 : vector<1x16xi1>
    %16 = arith.andi %15, %9 : vector<1x16xi1>
    %17 = vector.broadcast %5 : i32 to vector<1x16xi32>
    %18 = arith.addi %7, %17 : vector<1x16xi32>
    %19 = arith.select %16, %18, %7 : vector<1x16xi1>, vector<1x16xi32>
    %c0_i32_8 = arith.constant 0 : i32
    %20 = vector.broadcast %c0_i32_8 : i32 to vector<1x16xi32>
    %21 = arith.cmpi eq, %19, %20 : vector<1x16xi32>
    %c16_i32 = arith.constant 16 : i32
    %22 = vector.broadcast %c16_i32 : i32 to vector<1x16xi32>
    %23 = arith.cmpi slt, %3, %22 : vector<1x16xi32>
    %24 = arith.andi %21, %23 : vector<1x16xi1>
    %c0_9 = arith.constant 0 : index
    %c0_10 = arith.constant 0 : index
    %c0_11 = arith.constant 0 : index
    %c0_12 = arith.constant 0 : index
    %25 = vector.load %arg2[%c0_9, %c0_10, %c0_11, %c0_12] : memref<1x4x16x16xf32, #tpu.memory_space<vmem>>, vector<1x4x1x16xf32>
    %26 = vector.shape_cast %25 : vector<1x4x1x16xf32> to vector<4x16xf32>
    %c0_13 = arith.constant 0 : index
    %c0_14 = arith.constant 0 : index
    %c1 = arith.constant 1 : index
    %c0_15 = arith.constant 0 : index
    %27 = vector.load %arg2[%c0_13, %c0_14, %c1, %c0_15] : memref<1x4x16x16xf32, #tpu.memory_space<vmem>>, vector<1x4x1x16xf32>
    %28 = vector.shape_cast %27 : vector<1x4x1x16xf32> to vector<4x16xf32>
    %29 = arith.maximumf %26, %28 : vector<4x16xf32>
    %c15_i32 = arith.constant 15 : i32
    %30 = tpu.dynamic_rotate %29 by %c15_i32 dim 1 : vector<4x16xf32>, i32 -> vector<4x16xf32>
    %31 = arith.maximumf %29, %30 : vector<4x16xf32>
    %cst = arith.constant 0.000000e+00 : f32
    %32 = vector.broadcast %cst : f32 to vector<4x16xf32>
    %33 = vector.shape_cast %24 : vector<1x16xi1> to vector<1x16xi1>
    %34 = vector.broadcast %33 : vector<1x16xi1> to vector<4x16xi1>
    %35 = arith.select %34, %31, %32 : vector<4x16xi1>, vector<4x16xf32>
    %cst_16 = arith.constant dense<0.000000e+00> : vector<4x8xf32>
    %36 = tpu.matmul %35, %0, %cst_16 {dimension_numbers = #tpu.dot_dimension_numbers<[1], [0], [0], [1], [0, 0, 1, 1], [], []>} : vector<4x16xf32>, vector<16x8xf32>, vector<4x8xf32> -> vector<4x8xf32>
    %cst_17 = arith.constant dense<0.000000e+00> : vector<8x8xf32>
    %37 = tpu.matmul %1, %36, %cst_17 {dimension_numbers = #tpu.dot_dimension_numbers<[1], [0], [0], [1], [0, 0, 1, 1], [], []>} : vector<8x4xf32>, vector<4x8xf32>, vector<8x8xf32> -> vector<8x8xf32>
    %38 = vector.broadcast %2 : vector<8x1xf32> to vector<8x8xf32>
    %39 = arith.addf %37, %38 : vector<8x8xf32>
    %c0_18 = arith.constant 0 : index
    %c0_19 = arith.constant 0 : index
    %c0_20 = arith.constant 0 : index
    %40 = vector.load %arg6[%c0_18, %c0_19, %c0_20] : memref<1x8x64xf32, #tpu.memory_space<vmem>>, vector<1x8x8xf32>
    %41 = vector.shape_cast %40 : vector<1x8x8xf32> to vector<8x8xf32>
    %42 = vector.shape_cast %39 : vector<8x8xf32> to vector<1x8x8xf32>
    tpu.vector_store %arg6[%c0_18, %c0_19, %c0_20], %42 {strides = array<i32>} : memref<1x8x64xf32, #tpu.memory_space<vmem>>, vector<1x8x8xf32>,
    %c0_21 = arith.constant 0 : index
    %c0_22 = arith.constant 0 : index
    %c2 = arith.constant 2 : index
    %c0_23 = arith.constant 0 : index
    %43 = vector.load %arg2[%c0_21, %c0_22, %c2, %c0_23] : memref<1x4x16x16xf32, #tpu.memory_space<vmem>>, vector<1x4x1x16xf32>
    %44 = vector.shape_cast %43 : vector<1x4x1x16xf32> to vector<4x16xf32>
    %c0_24 = arith.constant 0 : index
    %c0_25 = arith.constant 0 : index
    %c3 = arith.constant 3 : index
    %c0_26 = arith.constant 0 : index
    %45 = vector.load %arg2[%c0_24, %c0_25, %c3, %c0_26] : memref<1x4x16x16xf32, #tpu.memory_space<vmem>>, vector<1x4x1x16xf32>
    %46 = vector.shape_cast %45 : vector<1x4x1x16xf32> to vector<4x16xf32>
    %47 = arith.maximumf %44, %46 : vector<4x16xf32>
    %c15_i32_27 = arith.constant 15 : i32
    %48 = tpu.dynamic_rotate %47 by %c15_i32_27 dim 1 : vector<4x16xf32>, i32 -> vector<4x16xf32>
    %49 = arith.maximumf %47, %48 : vector<4x16xf32>
    %cst_28 = arith.constant 0.000000e+00 : f32
    %50 = vector.broadcast %cst_28 : f32 to vector<4x16xf32>
    %51 = vector.shape_cast %24 : vector<1x16xi1> to vector<1x16xi1>
    %52 = vector.broadcast %51 : vector<1x16xi1> to vector<4x16xi1>
    %53 = arith.select %52, %49, %50 : vector<4x16xi1>, vector<4x16xf32>
    %cst_29 = arith.constant dense<0.000000e+00> : vector<4x8xf32>
    %54 = tpu.matmul %53, %0, %cst_29 {dimension_numbers = #tpu.dot_dimension_numbers<[1], [0], [0], [1], [0, 0, 1, 1], [], []>} : vector<4x16xf32>, vector<16x8xf32>, vector<4x8xf32> -> vector<4x8xf32>
    %cst_30 = arith.constant dense<0.000000e+00> : vector<8x8xf32>
    %55 = tpu.matmul %1, %54, %cst_30 {dimension_numbers = #tpu.dot_dimension_numbers<[1], [0], [0], [1], [0, 0, 1, 1], [], []>} : vector<8x4xf32>, vector<4x8xf32>, vector<8x8xf32> -> vector<8x8xf32>
    %56 = vector.broadcast %2 : vector<8x1xf32> to vector<8x8xf32>
    %57 = arith.addf %55, %56 : vector<8x8xf32>
    %c0_31 = arith.constant 0 : index
    %c0_32 = arith.constant 0 : index
    %c8 = arith.constant 8 : index
    %58 = vector.load %arg6[%c0_31, %c0_32, %c8] : memref<1x8x64xf32, #tpu.memory_space<vmem>>, vector<1x8x8xf32>
    %59 = vector.shape_cast %58 : vector<1x8x8xf32> to vector<8x8xf32>
    %60 = vector.shape_cast %57 : vector<8x8xf32> to vector<1x8x8xf32>
    tpu.vector_store %arg6[%c0_31, %c0_32, %c8], %60 {strides = array<i32>} : memref<1x8x64xf32, #tpu.memory_space<vmem>>, vector<1x8x8xf32>,
    %c0_33 = arith.constant 0 : index
    %c0_34 = arith.constant 0 : index
    %c4 = arith.constant 4 : index
    %c0_35 = arith.constant 0 : index
    %61 = vector.load %arg2[%c0_33, %c0_34, %c4, %c0_35] : memref<1x4x16x16xf32, #tpu.memory_space<vmem>>, vector<1x4x1x16xf32>
    %62 = vector.shape_cast %61 : vector<1x4x1x16xf32> to vector<4x16xf32>
    %c0_36 = arith.constant 0 : index
    %c0_37 = arith.constant 0 : index
    %c5 = arith.constant 5 : index
    %c0_38 = arith.constant 0 : index
    %63 = vector.load %arg2[%c0_36, %c0_37, %c5, %c0_38] : memref<1x4x16x16xf32, #tpu.memory_space<vmem>>, vector<1x4x1x16xf32>
    %64 = vector.shape_cast %63 : vector<1x4x1x16xf32> to vector<4x16xf32>
    %65 = arith.maximumf %62, %64 : vector<4x16xf32>
    %c15_i32_39 = arith.constant 15 : i32
    %66 = tpu.dynamic_rotate %65 by %c15_i32_39 dim 1 : vector<4x16xf32>, i32 -> vector<4x16xf32>
    %67 = arith.maximumf %65, %66 : vector<4x16xf32>
    %cst_40 = arith.constant 0.000000e+00 : f32
    %68 = vector.broadcast %cst_40 : f32 to vector<4x16xf32>
    %69 = vector.shape_cast %24 : vector<1x16xi1> to vector<1x16xi1>
    %70 = vector.broadcast %69 : vector<1x16xi1> to vector<4x16xi1>
    %71 = arith.select %70, %67, %68 : vector<4x16xi1>, vector<4x16xf32>
    %cst_41 = arith.constant dense<0.000000e+00> : vector<4x8xf32>
    %72 = tpu.matmul %71, %0, %cst_41 {dimension_numbers = #tpu.dot_dimension_numbers<[1], [0], [0], [1], [0, 0, 1, 1], [], []>} : vector<4x16xf32>, vector<16x8xf32>, vector<4x8xf32> -> vector<4x8xf32>
    %cst_42 = arith.constant dense<0.000000e+00> : vector<8x8xf32>
    %73 = tpu.matmul %1, %72, %cst_42 {dimension_numbers = #tpu.dot_dimension_numbers<[1], [0], [0], [1], [0, 0, 1, 1], [], []>} : vector<8x4xf32>, vector<4x8xf32>, vector<8x8xf32> -> vector<8x8xf32>
    %74 = vector.broadcast %2 : vector<8x1xf32> to vector<8x8xf32>
    %75 = arith.addf %73, %74 : vector<8x8xf32>
    %c0_43 = arith.constant 0 : index
    %c0_44 = arith.constant 0 : index
    %c16 = arith.constant 16 : index
    %76 = vector.load %arg6[%c0_43, %c0_44, %c16] : memref<1x8x64xf32, #tpu.memory_space<vmem>>, vector<1x8x8xf32>
    %77 = vector.shape_cast %76 : vector<1x8x8xf32> to vector<8x8xf32>
    %78 = vector.shape_cast %75 : vector<8x8xf32> to vector<1x8x8xf32>
    tpu.vector_store %arg6[%c0_43, %c0_44, %c16], %78 {strides = array<i32>} : memref<1x8x64xf32, #tpu.memory_space<vmem>>, vector<1x8x8xf32>,
    %c0_45 = arith.constant 0 : index
    %c0_46 = arith.constant 0 : index
    %c6 = arith.constant 6 : index
    %c0_47 = arith.constant 0 : index
    %79 = vector.load %arg2[%c0_45, %c0_46, %c6, %c0_47] : memref<1x4x16x16xf32, #tpu.memory_space<vmem>>, vector<1x4x1x16xf32>
    %80 = vector.shape_cast %79 : vector<1x4x1x16xf32> to vector<4x16xf32>
    %c0_48 = arith.constant 0 : index
    %c0_49 = arith.constant 0 : index
    %c7 = arith.constant 7 : index
    %c0_50 = arith.constant 0 : index
    %81 = vector.load %arg2[%c0_48, %c0_49, %c7, %c0_50] : memref<1x4x16x16xf32, #tpu.memory_space<vmem>>, vector<1x4x1x16xf32>
    %82 = vector.shape_cast %81 : vector<1x4x1x16xf32> to vector<4x16xf32>
    %83 = arith.maximumf %80, %82 : vector<4x16xf32>
    %c15_i32_51 = arith.constant 15 : i32
    %84 = tpu.dynamic_rotate %83 by %c15_i32_51 dim 1 : vector<4x16xf32>, i32 -> vector<4x16xf32>
    %85 = arith.maximumf %83, %84 : vector<4x16xf32>
    %cst_52 = arith.constant 0.000000e+00 : f32
    %86 = vector.broadcast %cst_52 : f32 to vector<4x16xf32>
    %87 = vector.shape_cast %24 : vector<1x16xi1> to vector<1x16xi1>
    %88 = vector.broadcast %87 : vector<1x16xi1> to vector<4x16xi1>
    %89 = arith.select %88, %85, %86 : vector<4x16xi1>, vector<4x16xf32>
    %cst_53 = arith.constant dense<0.000000e+00> : vector<4x8xf32>
    %90 = tpu.matmul %89, %0, %cst_53 {dimension_numbers = #tpu.dot_dimension_numbers<[1], [0], [0], [1], [0, 0, 1, 1], [], []>} : vector<4x16xf32>, vector<16x8xf32>, vector<4x8xf32> -> vector<4x8xf32>
    %cst_54 = arith.constant dense<0.000000e+00> : vector<8x8xf32>
    %91 = tpu.matmul %1, %90, %cst_54 {dimension_numbers = #tpu.dot_dimension_numbers<[1], [0], [0], [1], [0, 0, 1, 1], [], []>} : vector<8x4xf32>, vector<4x8xf32>, vector<8x8xf32> -> vector<8x8xf32>
    %92 = vector.broadcast %2 : vector<8x1xf32> to vector<8x8xf32>
    %93 = arith.addf %91, %92 : vector<8x8xf32>
    %c0_55 = arith.constant 0 : index
    %c0_56 = arith.constant 0 : index
    %c24 = arith.constant 24 : index
    %94 = vector.load %arg6[%c0_55, %c0_56, %c24] : memref<1x8x64xf32, #tpu.memory_space<vmem>>, vector<1x8x8xf32>
    %95 = vector.shape_cast %94 : vector<1x8x8xf32> to vector<8x8xf32>
    %96 = vector.shape_cast %93 : vector<8x8xf32> to vector<1x8x8xf32>
    tpu.vector_store %arg6[%c0_55, %c0_56, %c24], %96 {strides = array<i32>} : memref<1x8x64xf32, #tpu.memory_space<vmem>>, vector<1x8x8xf32>,
    %c0_57 = arith.constant 0 : index
    %c0_58 = arith.constant 0 : index
    %c8_59 = arith.constant 8 : index
    %c0_60 = arith.constant 0 : index
    %97 = vector.load %arg2[%c0_57, %c0_58, %c8_59, %c0_60] : memref<1x4x16x16xf32, #tpu.memory_space<vmem>>, vector<1x4x1x16xf32>
    %98 = vector.shape_cast %97 : vector<1x4x1x16xf32> to vector<4x16xf32>
    %c0_61 = arith.constant 0 : index
    %c0_62 = arith.constant 0 : index
    %c9 = arith.constant 9 : index
    %c0_63 = arith.constant 0 : index
    %99 = vector.load %arg2[%c0_61, %c0_62, %c9, %c0_63] : memref<1x4x16x16xf32, #tpu.memory_space<vmem>>, vector<1x4x1x16xf32>
    %100 = vector.shape_cast %99 : vector<1x4x1x16xf32> to vector<4x16xf32>
    %101 = arith.maximumf %98, %100 : vector<4x16xf32>
    %c15_i32_64 = arith.constant 15 : i32
    %102 = tpu.dynamic_rotate %101 by %c15_i32_64 dim 1 : vector<4x16xf32>, i32 -> vector<4x16xf32>
    %103 = arith.maximumf %101, %102 : vector<4x16xf32>
    %cst_65 = arith.constant 0.000000e+00 : f32
    %104 = vector.broadcast %cst_65 : f32 to vector<4x16xf32>
    %105 = vector.shape_cast %24 : vector<1x16xi1> to vector<1x16xi1>
    %106 = vector.broadcast %105 : vector<1x16xi1> to vector<4x16xi1>
    %107 = arith.select %106, %103, %104 : vector<4x16xi1>, vector<4x16xf32>
    %cst_66 = arith.constant dense<0.000000e+00> : vector<4x8xf32>
    %108 = tpu.matmul %107, %0, %cst_66 {dimension_numbers = #tpu.dot_dimension_numbers<[1], [0], [0], [1], [0, 0, 1, 1], [], []>} : vector<4x16xf32>, vector<16x8xf32>, vector<4x8xf32> -> vector<4x8xf32>
    %cst_67 = arith.constant dense<0.000000e+00> : vector<8x8xf32>
    %109 = tpu.matmul %1, %108, %cst_67 {dimension_numbers = #tpu.dot_dimension_numbers<[1], [0], [0], [1], [0, 0, 1, 1], [], []>} : vector<8x4xf32>, vector<4x8xf32>, vector<8x8xf32> -> vector<8x8xf32>
    %110 = vector.broadcast %2 : vector<8x1xf32> to vector<8x8xf32>
    %111 = arith.addf %109, %110 : vector<8x8xf32>
    %c0_68 = arith.constant 0 : index
    %c0_69 = arith.constant 0 : index
    %c32 = arith.constant 32 : index
    %112 = vector.load %arg6[%c0_68, %c0_69, %c32] : memref<1x8x64xf32, #tpu.memory_space<vmem>>, vector<1x8x8xf32>
    %113 = vector.shape_cast %112 : vector<1x8x8xf32> to vector<8x8xf32>
    %114 = vector.shape_cast %111 : vector<8x8xf32> to vector<1x8x8xf32>
    tpu.vector_store %arg6[%c0_68, %c0_69, %c32], %114 {strides = array<i32>} : memref<1x8x64xf32, #tpu.memory_space<vmem>>, vector<1x8x8xf32>,
    %c0_70 = arith.constant 0 : index
    %c0_71 = arith.constant 0 : index
    %c10 = arith.constant 10 : index
    %c0_72 = arith.constant 0 : index
    %115 = vector.load %arg2[%c0_70, %c0_71, %c10, %c0_72] : memref<1x4x16x16xf32, #tpu.memory_space<vmem>>, vector<1x4x1x16xf32>
    %116 = vector.shape_cast %115 : vector<1x4x1x16xf32> to vector<4x16xf32>
    %c0_73 = arith.constant 0 : index
    %c0_74 = arith.constant 0 : index
    %c11 = arith.constant 11 : index
    %c0_75 = arith.constant 0 : index
    %117 = vector.load %arg2[%c0_73, %c0_74, %c11, %c0_75] : memref<1x4x16x16xf32, #tpu.memory_space<vmem>>, vector<1x4x1x16xf32>
    %118 = vector.shape_cast %117 : vector<1x4x1x16xf32> to vector<4x16xf32>
    %119 = arith.maximumf %116, %118 : vector<4x16xf32>
    %c15_i32_76 = arith.constant 15 : i32
    %120 = tpu.dynamic_rotate %119 by %c15_i32_76 dim 1 : vector<4x16xf32>, i32 -> vector<4x16xf32>
    %121 = arith.maximumf %119, %120 : vector<4x16xf32>
    %cst_77 = arith.constant 0.000000e+00 : f32
    %122 = vector.broadcast %cst_77 : f32 to vector<4x16xf32>
    %123 = vector.shape_cast %24 : vector<1x16xi1> to vector<1x16xi1>
    %124 = vector.broadcast %123 : vector<1x16xi1> to vector<4x16xi1>
    %125 = arith.select %124, %121, %122 : vector<4x16xi1>, vector<4x16xf32>
    %cst_78 = arith.constant dense<0.000000e+00> : vector<4x8xf32>
    %126 = tpu.matmul %125, %0, %cst_78 {dimension_numbers = #tpu.dot_dimension_numbers<[1], [0], [0], [1], [0, 0, 1, 1], [], []>} : vector<4x16xf32>, vector<16x8xf32>, vector<4x8xf32> -> vector<4x8xf32>
    %cst_79 = arith.constant dense<0.000000e+00> : vector<8x8xf32>
    %127 = tpu.matmul %1, %126, %cst_79 {dimension_numbers = #tpu.dot_dimension_numbers<[1], [0], [0], [1], [0, 0, 1, 1], [], []>} : vector<8x4xf32>, vector<4x8xf32>, vector<8x8xf32> -> vector<8x8xf32>
    %128 = vector.broadcast %2 : vector<8x1xf32> to vector<8x8xf32>
    %129 = arith.addf %127, %128 : vector<8x8xf32>
    %c0_80 = arith.constant 0 : index
    %c0_81 = arith.constant 0 : index
    %c40 = arith.constant 40 : index
    %130 = vector.load %arg6[%c0_80, %c0_81, %c40] : memref<1x8x64xf32, #tpu.memory_space<vmem>>, vector<1x8x8xf32>
    %131 = vector.shape_cast %130 : vector<1x8x8xf32> to vector<8x8xf32>
    %132 = vector.shape_cast %129 : vector<8x8xf32> to vector<1x8x8xf32>
    tpu.vector_store %arg6[%c0_80, %c0_81, %c40], %132 {strides = array<i32>} : memref<1x8x64xf32, #tpu.memory_space<vmem>>, vector<1x8x8xf32>,
    %c0_82 = arith.constant 0 : index
    %c0_83 = arith.constant 0 : index
    %c12 = arith.constant 12 : index
    %c0_84 = arith.constant 0 : index
    %133 = vector.load %arg2[%c0_82, %c0_83, %c12, %c0_84] : memref<1x4x16x16xf32, #tpu.memory_space<vmem>>, vector<1x4x1x16xf32>
    %134 = vector.shape_cast %133 : vector<1x4x1x16xf32> to vector<4x16xf32>
    %c0_85 = arith.constant 0 : index
    %c0_86 = arith.constant 0 : index
    %c13 = arith.constant 13 : index
    %c0_87 = arith.constant 0 : index
    %135 = vector.load %arg2[%c0_85, %c0_86, %c13, %c0_87] : memref<1x4x16x16xf32, #tpu.memory_space<vmem>>, vector<1x4x1x16xf32>
    %136 = vector.shape_cast %135 : vector<1x4x1x16xf32> to vector<4x16xf32>
    %137 = arith.maximumf %134, %136 : vector<4x16xf32>
    %c15_i32_88 = arith.constant 15 : i32
    %138 = tpu.dynamic_rotate %137 by %c15_i32_88 dim 1 : vector<4x16xf32>, i32 -> vector<4x16xf32>
    %139 = arith.maximumf %137, %138 : vector<4x16xf32>
    %cst_89 = arith.constant 0.000000e+00 : f32
    %140 = vector.broadcast %cst_89 : f32 to vector<4x16xf32>
    %141 = vector.shape_cast %24 : vector<1x16xi1> to vector<1x16xi1>
    %142 = vector.broadcast %141 : vector<1x16xi1> to vector<4x16xi1>
    %143 = arith.select %142, %139, %140 : vector<4x16xi1>, vector<4x16xf32>
    %cst_90 = arith.constant dense<0.000000e+00> : vector<4x8xf32>
    %144 = tpu.matmul %143, %0, %cst_90 {dimension_numbers = #tpu.dot_dimension_numbers<[1], [0], [0], [1], [0, 0, 1, 1], [], []>} : vector<4x16xf32>, vector<16x8xf32>, vector<4x8xf32> -> vector<4x8xf32>
    %cst_91 = arith.constant dense<0.000000e+00> : vector<8x8xf32>
    %145 = tpu.matmul %1, %144, %cst_91 {dimension_numbers = #tpu.dot_dimension_numbers<[1], [0], [0], [1], [0, 0, 1, 1], [], []>} : vector<8x4xf32>, vector<4x8xf32>, vector<8x8xf32> -> vector<8x8xf32>
    %146 = vector.broadcast %2 : vector<8x1xf32> to vector<8x8xf32>
    %147 = arith.addf %145, %146 : vector<8x8xf32>
    %c0_92 = arith.constant 0 : index
    %c0_93 = arith.constant 0 : index
    %c48 = arith.constant 48 : index
    %148 = vector.load %arg6[%c0_92, %c0_93, %c48] : memref<1x8x64xf32, #tpu.memory_space<vmem>>, vector<1x8x8xf32>
    %149 = vector.shape_cast %148 : vector<1x8x8xf32> to vector<8x8xf32>
    %150 = vector.shape_cast %147 : vector<8x8xf32> to vector<1x8x8xf32>
    tpu.vector_store %arg6[%c0_92, %c0_93, %c48], %150 {strides = array<i32>} : memref<1x8x64xf32, #tpu.memory_space<vmem>>, vector<1x8x8xf32>,
    %c0_94 = arith.constant 0 : index
    %c0_95 = arith.constant 0 : index
    %c14 = arith.constant 14 : index
    %c0_96 = arith.constant 0 : index
    %151 = vector.load %arg2[%c0_94, %c0_95, %c14, %c0_96] : memref<1x4x16x16xf32, #tpu.memory_space<vmem>>, vector<1x4x1x16xf32>
    %152 = vector.shape_cast %151 : vector<1x4x1x16xf32> to vector<4x16xf32>
    %c0_97 = arith.constant 0 : index
    %c0_98 = arith.constant 0 : index
    %c15 = arith.constant 15 : index
    %c0_99 = arith.constant 0 : index
    %153 = vector.load %arg2[%c0_97, %c0_98, %c15, %c0_99] : memref<1x4x16x16xf32, #tpu.memory_space<vmem>>, vector<1x4x1x16xf32>
    %154 = vector.shape_cast %153 : vector<1x4x1x16xf32> to vector<4x16xf32>
    %155 = arith.maximumf %152, %154 : vector<4x16xf32>
    %c15_i32_100 = arith.constant 15 : i32
    %156 = tpu.dynamic_rotate %155 by %c15_i32_100 dim 1 : vector<4x16xf32>, i32 -> vector<4x16xf32>
    %157 = arith.maximumf %155, %156 : vector<4x16xf32>
    %cst_101 = arith.constant 0.000000e+00 : f32
    %158 = vector.broadcast %cst_101 : f32 to vector<4x16xf32>
    %159 = vector.shape_cast %24 : vector<1x16xi1> to vector<1x16xi1>
    %160 = vector.broadcast %159 : vector<1x16xi1> to vector<4x16xi1>
    %161 = arith.select %160, %157, %158 : vector<4x16xi1>, vector<4x16xf32>
    %cst_102 = arith.constant dense<0.000000e+00> : vector<4x8xf32>
    %162 = tpu.matmul %161, %0, %cst_102 {dimension_numbers = #tpu.dot_dimension_numbers<[1], [0], [0], [1], [0, 0, 1, 1], [], []>} : vector<4x16xf32>, vector<16x8xf32>, vector<4x8xf32> -> vector<4x8xf32>
    %cst_103 = arith.constant dense<0.000000e+00> : vector<8x8xf32>
    %163 = tpu.matmul %1, %162, %cst_103 {dimension_numbers = #tpu.dot_dimension_numbers<[1], [0], [0], [1], [0, 0, 1, 1], [], []>} : vector<8x4xf32>, vector<4x8xf32>, vector<8x8xf32> -> vector<8x8xf32>
    %164 = vector.broadcast %2 : vector<8x1xf32> to vector<8x8xf32>
    %165 = arith.addf %163, %164 : vector<8x8xf32>
    %c0_104 = arith.constant 0 : index
    %c0_105 = arith.constant 0 : index
    %c56 = arith.constant 56 : index
    %166 = vector.load %arg6[%c0_104, %c0_105, %c56] : memref<1x8x64xf32, #tpu.memory_space<vmem>>, vector<1x8x8xf32>
    %167 = vector.shape_cast %166 : vector<1x8x8xf32> to vector<8x8xf32>
    %168 = vector.shape_cast %165 : vector<8x8xf32> to vector<1x8x8xf32>
    tpu.vector_store %arg6[%c0_104, %c0_105, %c56], %168 {strides = array<i32>} : memref<1x8x64xf32, #tpu.memory_space<vmem>>, vector<1x8x8xf32>,
    return
  }
  func.func @transform_0(%arg0: i32, %arg1: i32) -> (i32, i32, i32, i32) {
    %c0_i32 = arith.constant 0 : i32
    %c0_i32_0 = arith.constant 0 : i32
    %c0_i32_1 = arith.constant 0 : i32
    return %arg0, %c0_i32, %arg1, %c0_i32_0 : i32, i32, i32, i32
  }
  func.func @transform_1(%arg0: i32, %arg1: i32) -> (i32, i32) {
    %c0_i32 = arith.constant 0 : i32
    %c0_i32_0 = arith.constant 0 : i32
    %c0_i32_1 = arith.constant 0 : i32
    return %c0_i32, %c0_i32_0 : i32, i32
  }
  func.func @transform_2(%arg0: i32, %arg1: i32) -> (i32, i32) {
    %c0_i32 = arith.constant 0 : i32
    %c0_i32_0 = arith.constant 0 : i32
    %c0_i32_1 = arith.constant 0 : i32
    return %c0_i32, %c0_i32_0 : i32, i32
  }
  func.func @transform_3(%arg0: i32, %arg1: i32) -> (i32, i32) {
    %c0_i32 = arith.constant 0 : i32
    %c0_i32_0 = arith.constant 0 : i32
    %c0_i32_1 = arith.constant 0 : i32
    return %c0_i32, %c0_i32_0 : i32, i32
  }
  func.func @transform_4(%arg0: i32, %arg1: i32) -> (i32, i32, i32) {
    %c0_i32 = arith.constant 0 : i32
    %c0_i32_0 = arith.constant 0 : i32
    return %arg0, %c0_i32, %arg1 : i32, i32, i32
  }
}

</mosaic_0001>

<bundles_post_ra>
// kernel: tpu_custom_call.1
= control target key start
LH: loop header
LB: loop body
LE: loop exit
PB: predicated region body
PF: predicated region fallthrough
CT: control target
= control target key end

     0   :  { %9 = vsyncpa [#allocation3], 0  ;;  %s3137_s0 = inlined_call_operand.hbm [shape: f32[2,4,16,16], index: 0, kind: input, shape index: {}]   ;;  %s3138_s1 = inlined_call_operand.vmem [shape: f32[16,8], index: 1, kind: input, shape index: {}]   ;;  %s3139_s2 = inlined_call_operand.vmem [shape: f32[8,4], index: 2, kind: input, shape index: {}]   ;;  %s3140_s3 = inlined_call_operand.vmem [shape: f32[8,1], index: 3, kind: input, shape index: {}]   ;;  %s3141_s4 = inlined_call_operand.hbm [shape: f32[2,8,64], index: 4, kind: output, shape index: {}]  }
   0x1   :  { %11 = vsyncpa [#allocation3 + $0x1], 0 }
   0x2   :  { %12 = vsyncpa [#allocation4], 0 }
   0x3   :  { %14 = vsyncpa [#allocation4 + $0x1], 0  ;;  %s2471_s15 = smov 0   ;;  %s2473_s16 = smov 0  }
   0x4   :  { %s2475_s17 = smov 0   ;;  %s2477_s18 = smov 0  }
   0x5   :  { %s2479_s19 = smov 0   ;;  %s2481_s20 = smov 0  }
   0x6 LB: > { %s2070_s21 = sadd.s32 4294967295, %s2429_s20   ;;  %s2071_s22 = sadd.s32 4294967294, %s2429_s20   ;;  %s2429_s20 = sphi %s2481_s20, %s20_s20   ;;  %s2425_s19 = sphi %s2479_s19, %s3154_s19   ;;  %s2421_s18 = sphi %s2477_s18, %s3153_s18   ;;  %s2417_s17 = sphi %s2475_s17, %s3152_s17   ;;  %s2413_s16 = sphi %s2473_s16, %s3151_s16   ;;  %s2409_s15 = sphi %s2471_s15, %s3150_s15  }
   0x7   : > { %s32_s23 = sadd.s32 1, %s2425_s19  ;;  %s41_s24 = sadd.s32 1, %s2417_s17 }
   0x8   : > { %p34_p0 = scmp.ge.s32.totalorder %s32_s23, 2  ;;  %p48_p1 = scmp.ne.s32.totalorder %s2417_s17, %s2413_s16 }
   0x9   : > { %p49_p2 = scmp.eq.s32.totalorder %s2429_s20, 0  ;;  %p54_p3 = scmp.ne.s32.totalorder %s2413_s16, %s2409_s15 }
   0xa   : > { %s3156_s23 = smov (%p34_p0, %s32_s23), 0  ;;  %p55_p5 = scmp.eq.s32.totalorder %s2070_s21, 0 }
   0xb   : > { %p2512_p4 = por %p49_p2, %p48_p1  ;;  %s36_s26 = ssub.s32 %s2425_s19, %s3156_s23 }
   0xc   : > { %p143_p6 = scmp.eq.s32.totalorder %s2070_s21, 1  ;;  %p39_p7 = scmp.eq.s32.totalorder %s36_s26, 0 }
   0xd   : > { %p2518_p8 = por %p55_p5, %p54_p3  ;;  %p149_p10 = scmp.eq.s32.totalorder %s2071_s22, 1 }
   0xe   : > { %p2522_p9 = por %p143_p6, %p48_p1  ;;  %p2257_p13 = scmp.lt.s32.totalorder %s2429_s20, 2 }
   0xf   : > { %s2527_s29 = scalar_select %p39_p7, %s2417_s17, %s41_s24  }
  0x10   : > { %p2529_p11 = por %p149_p10, %p54_p3  ;;  %s178_s5 = sand.u32 1, %s2417_s17  }
  0x11   : > { %s2074_s6 = sshll.u32 %s178_s5, 6  ;;  %s2108_s7 = sshll.u32 %s2425_s19, 10 }
  0x12   : > { %s190_s10 = scalar_lea.hbm %s3137_s0, %s2108_s7  ;;  %s182_s11 = scalar_lea.vmem [#allocation2], %s2074_s6 }
  0x13   : > { %s191_s12 = sshll.u32 %s182_s11, 4  ;;  %p2542_p0 = pnand %p2257_p13, %p2512_p4  ;;  %s192_s12 = int_to_ptr.vmem [resolvable:$true] %s191_s12 }
  0x14   : > { %p2077_p1 = scmp.ge.s32.totalorder %s2429_s20, 1  ;;  %s179_s14 = scalar_lea.sflag [#allocation3], %s178_s5 }
  0x15   : > { %p2323_p2 = pneg %p2542_p0  ;;  %s2334_s21 = scalar_lea.vmem %s192_s12, 1024 }
  0x16   : > { %p2335_p3 = scmp.ne.s32.totalorder %s192_s12, %s2334_s21  ;;  %s2431_s22 = smov [#allocation2]  }
  0x17   : > { %s2339_s24 = sshll.u32 %s2431_s22, 4  ;;  %s2340_s24 = int_to_ptr.vmem [resolvable:$false] %s2339_s24 }
  0x18   : > { %p2337_p5 = pnand %p2335_p3, %p2323_p2  ;;  %s2341_s26 = scalar_lea.vmem %s2340_s24, 2048 }
  0x19   : > { %p2342_p7 = scmp.lt.s32.totalorder %s192_s12, %s2340_s24  ;;  %p2343_p10 = scmp.lt.s32.totalorder %s2341_s26, %s2334_s21 }
  0x1a   : > { %p2338_p6 = pneg %p2337_p5 }
  0x1b   : > { %p2344_p12 = por %p2343_p10, %p2342_p7 }
  0x1d   : > { %p2345_p4 = pnand %p2344_p12, %p2338_p6 }
  0x1f   : > { %2348 = shalt.err (!%p2345_p4)
}
  0x20   : > { %s2432_s25 = smov 128   ;;  %s2433_s5 = smov 8  }
  0x21   : > { %2252 = dma.hbm_to_vmem [thread:$0]  (!%p2542_p0), %s190_s10, 1024, %s192_s12, %s179_s14, %s2432_s25, %s2432_s25, %s2433_s5  }
  0x22   : > { %p199_p13 = scmp.lt.s32.totalorder %s2429_s20, 3 }
  0x24   : > { %p200_p2 = pnand %p2077_p1, %p199_p13 }
  0x25   : > { %s2555_s6 = sand.u32 (!%p200_p2), 1, %s2413_s16  }
  0x26   : > { %203 = sbr.rel (%p200_p2) target bundleno = 1218 (0x4c2), region = 36  ;;  %s2078_s7 = sshll.u32 (!%p200_p2), %s2555_s6, 6 }
  0x27   : > { %s206_s8 = scalar_lea.sflag (!%p200_p2), [#allocation3], %s2555_s6  ;;  %s2559_s9 = scalar_lea.vmem (!%p200_p2), [#allocation2], %s2078_s7 }
  0x2b   : > { %2400 = dma.done.wait (%p2518_p8), %s206_s8, 1024  }
  0x2c   : > { %2402 = vsyncadd (%p2518_p8), %s206_s8, 4294966272  ;;  %v256_v0 = vld [vmem:[%s2559_s9] sm:$0x1]  ;;  %v257_v1 = vld [vmem:[%s2559_s9 + $0x10] sm:$0x1]  ;;  %vm273_vm0 = vcmask 1041409  }
  0x2d   : > { %v258_v2 = vld [vmem:[%s2559_s9 + $0x20] sm:$0x1]  ;;  %v259_v3 = vld [vmem:[%s2559_s9 + $0x30] sm:$0x1]  ;;  %v260_v4 = vld [vmem:[%s2559_s9 + $0x1] sm:$0x1] }
  0x2e   : > { %v261_v5 = vld [vmem:[%s2559_s9 + $0x11] sm:$0x1]  ;;  %v262_v6 = vld [vmem:[%s2559_s9 + $0x21] sm:$0x1]  ;;  %v2573_v8 = vmax.f32 %v256_v0, %v260_v4  ;;  %vm276_vm1 = vcmask 1042434   ;;  %vm279_vm2 = vcmask 1043459  }
  0x2f   : > { %v263_v7 = vld [vmem:[%s2559_s9 + $0x31] sm:$0x1]  ;;  %v2575_v9 = vmax.f32 %v257_v1, %v261_v5  ;;  %v2577_v10 = vmax.f32 %v258_v2, %v262_v6  ;;  %s2434_s27 = smov 16   ;;  %vm282_vm3 = vcmask 1047680   ;;  %v483_v20 = vld [vmem:[%s2559_s9 + $0x12] sm:$0x1] }
  0x30   : > { %v2579_v11 = vmax.f32 %v259_v3, %v263_v7  ;;  %v487_v21 = vld [vmem:[%s2559_s9 + $0x13] sm:$0x1]  ;;  %v484_v22 = vld [vmem:[%s2559_s9 + $0x22] sm:$0x1]  ;;  %v485_v25 = vld [vmem:[%s2559_s9 + $0x32] sm:$0x1] }
  0x31   : > { %v272_v12 = vrot.slane %v2575_v9, 7  ;;  %v275_v13 = vrot.slane %v2577_v10, 6  ;;  %v2598_v23 = vmax.f32 %v483_v20, %v487_v21  ;;  %v482_v24 = vld [vmem:[%s2559_s9 + $0x2] sm:$0x1]  ;;  %v488_v26 = vld [vmem:[%s2559_s9 + $0x23] sm:$0x1] }
  0x32   : > { %v278_v14 = vrot.slane %v2579_v11, 5  ;;  %v486_v27 = vld [vmem:[%s2559_s9 + $0x3] sm:$0x1]  ;;  %v909_v28 = vld [vmem:[%s2559_s9 + $0x16] sm:$0x1]  ;;  %v2609_v33 = vmax.f32 %v484_v22, %v488_v26  ;;  %s2436_s12 = smov 127  }
  0x33   : > { %v274_v15 = vsel %vm273_vm0, %v272_v12, %v2573_v8  ;;  %v913_v29 = vld [vmem:[%s2559_s9 + $0x17] sm:$0x1]  ;;  %v489_v30 = vld [vmem:[%s2559_s9 + $0x33] sm:$0x1]  ;;  %v696_v31 = vld [vmem:[%s2559_s9 + $0x14] sm:$0x1]  ;;  %v2614_v37 = vmax.f32 %v482_v24, %v486_v27 }
  0x34   : > { %v277_v16 = vsel %vm276_vm1, %v275_v13, %v274_v15  ;;  %v700_v32 = vld [vmem:[%s2559_s9 + $0x15] sm:$0x1]  ;;  %v498_v34 = vrot.slane %v2598_v23, 7  ;;  %v697_v35 = vld [vmem:[%s2559_s9 + $0x24] sm:$0x1]  ;;  %v2619_v41 = vmax.f32 %v909_v28, %v913_v29  ;;  %v2621_v42 = vmax.f32 %v485_v25, %v489_v30  ;;  %s2079_s25 = sshll.u32 %s2555_s6, 3 }
  0x35   : > { %v2588_v17 = vsel %vm279_vm2, %v278_v14, %v277_v16  ;;  %v701_v36 = vld [vmem:[%s2559_s9 + $0x25] sm:$0x1]  ;;  %v908_v38 = vld [vmem:[%s2559_s9 + $0x6] sm:$0x1]  ;;  %v914_v40 = vld [vmem:[%s2559_s9 + $0x27] sm:$0x1]  ;;  %v2623_v43 = vmax.f32 %v696_v31, %v700_v32 }
  0x36   : > { %283 = vrot.lane.b32.xlu0 %v2588_v17, %s2434_s27  ;;  %v910_v39 = vld [vmem:[%s2559_s9 + $0x26] sm:$0x1]  ;;  %v911_v44 = vld [vmem:[%s2559_s9 + $0x36] sm:$0x1]  ;;  %v912_v45 = vld [vmem:[%s2559_s9 + $0x7] sm:$0x1]  ;;  %v2632_v51 = vmax.f32 %v697_v35, %v701_v36  ;;  %v499_v53 = vsel %vm273_vm0, %v498_v34, %v2614_v37 }
  0x37   : > { %v915_v46 = vld [vmem:[%s2559_s9 + $0x37] sm:$0x1]  ;;  %v1335_v47 = vld [vmem:[%s2559_s9 + $0x1a] sm:$0x1]  ;;  %v1339_v48 = vld [vmem:[%s2559_s9 + $0x1b] sm:$0x1]  ;;  %v2634_v52 = vmax.f32 %v910_v39, %v914_v40  ;;  %v2638_v54 = vmax.f32 %v908_v38, %v912_v45 }
  0x38   : > { %v500_v49 = vrot.slane %v2609_v33, 6  ;;  %v695_v50 = vld [vmem:[%s2559_s9 + $0x4] sm:$0x1]  ;;  %v2640_v55 = vmax.f32 %v911_v44, %v915_v46  ;;  %v924_v56 = vrot.slane %v2619_v41, 7  ;;  %v1336_v57 = vld [vmem:[%s2559_s9 + $0x2a] sm:$0x1]  ;;  %v2649_v63 = vmax.f32 %v1335_v47, %v1339_v48 }
  0x39   : > { %v1340_v58 = vld [vmem:[%s2559_s9 + $0x2b] sm:$0x1]  ;;  %v502_v59 = vrot.slane %v2621_v42, 5  ;;  %v699_v60 = vld [vmem:[%s2559_s9 + $0x5] sm:$0x1]  ;;  %v711_v61 = vrot.slane %v2623_v43, 7 }
  0x3a   : > { %v1334_v62 = vld [vmem:[%s2559_s9 + $0xa] sm:$0x1]  ;;  %v1338_v0 = vld [vmem:[%s2559_s9 + $0xb] sm:$0x1]  ;;  %v1761_v1 = vld [vmem:[%s2559_s9 + $0x1e] sm:$0x1]  ;;  %v501_v3 = vsel %vm276_vm1, %v500_v49, %v499_v53  ;;  %v2661_v14 = vmax.f32 %v1336_v57, %v1340_v58  ;;  %v2663_v16 = vmax.f32 %v695_v50, %v699_v60 }
  0x3b   : > { %v1765_v2 = vld [vmem:[%s2559_s9 + $0x1f] sm:$0x1]  ;;  %v698_v4 = vld [vmem:[%s2559_s9 + $0x34] sm:$0x1]  ;;  %v702_v5 = vld [vmem:[%s2559_s9 + $0x35] sm:$0x1]  ;;  %v2677_v27 = vmax.f32 %v1334_v62, %v1338_v0  ;;  %v2700_v39 = vsel %vm279_vm2, %v502_v59, %v501_v3 }
  0x3c   : > { %v713_v6 = vrot.slane %v2632_v51, 6  ;;  %v926_v7 = vrot.slane %v2634_v52, 6  ;;  %v1122_v12 = vld [vmem:[%s2559_s9 + $0x18] sm:$0x1]  ;;  %v1126_v13 = vld [vmem:[%s2559_s9 + $0x19] sm:$0x1]  ;;  %v2682_v31 = vmax.f32 %v1761_v1, %v1765_v2  ;;  %v2716_v48 = vmax.f32 %v698_v4, %v702_v5 }
  0x3d   : > { %v1337_v20 = vld [vmem:[%s2559_s9 + $0x3a] sm:$0x1]  ;;  %v1341_v21 = vld [vmem:[%s2559_s9 + $0x3b] sm:$0x1]  ;;  %v1121_v24 = vld [vmem:[%s2559_s9 + $0x8] sm:$0x1]  ;;  %v2694_v35 = vmax.f32 %v1122_v12, %v1126_v13  ;;  %v712_v58 = vsel %vm273_vm0, %v711_v61, %v2663_v16 }
  0x3e   : > { %v1123_v25 = vld [vmem:[%s2559_s9 + $0x28] sm:$0x1]  ;;  %v1125_v26 = vld [vmem:[%s2559_s9 + $0x9] sm:$0x1]  ;;  %v1350_v28 = vrot.slane %v2649_v63, 7  ;;  %v2435_v32 = vmov 0.0   ;;  %v2703_v44 = vmax.f32 %v1337_v20, %v1341_v21 }
  0x3f   : > { %v1762_v29 = vld [vmem:[%s2559_s9 + $0x2e] sm:$0x1]  ;;  %v1766_v30 = vld [vmem:[%s2559_s9 + $0x2f] sm:$0x1]  ;;  %2149 = vmatprep.subr.mxu0 %v2435_v32  ;;  %2156 = vmatprep.subr.mxu1 %v2435_v32  ;;  %v1127_v40 = vld [vmem:[%s2559_s9 + $0x29] sm:$0x1]  ;;  %v2740_v2 = vmax.f32 %v1121_v24, %v1125_v26 }
  0x40   : > { %v1760_v36 = vld [vmem:[%s2559_s9 + $0xe] sm:$0x1]  ;;  %v1764_v38 = vld [vmem:[%s2559_s9 + $0xf] sm:$0x1]  ;;  %v1352_v45 = vrot.slane %v2661_v14, 6  ;;  %vm2437_vm4 = vmmov 0   ;;  %v2722_v57 = vmax.f32 %v1762_v29, %v1766_v30  ;;  %v1351_v59 = vsel %vm273_vm0, %v1350_v28, %v2677_v27 }
  0x41   : > { %v1548_v46 = vld [vmem:[%s2559_s9 + $0x1c] sm:$0x1]  ;;  %2153 = vmatprep.mubr.msk.f32.mxu0 %vm2437_vm4, %v2435_v32  ;;  %v2713_v47 = vld [vmem:[%s3138_s1] sm:$0xff]  ;;  %v1552_v50 = vld [vmem:[%s2559_s9 + $0x1d] sm:$0x1]  ;;  %v2729_v60 = vmax.f32 %v1760_v36, %v1764_v38  ;;  %v1776_v62 = vrot.slane %v2682_v31, 7  ;;  %2158 = vmatprep.mubr.msk.f32.mxu1 %vm2437_vm4, %v2435_v32  ;;  %v2742_v3 = vmax.f32 %v1123_v25, %v1127_v40 }
  0x42   : > { %v1763_v53 = vld [vmem:[%s2559_s9 + $0x3e] sm:$0x1]  ;;  %v1124_v0 = vld [vmem:[%s2559_s9 + $0x38] sm:$0x1]  ;;  %v1128_v1 = vld [vmem:[%s2559_s9 + $0x39] sm:$0x1]  ;;  %v1353_v20 = vsel %vm276_vm1, %v1352_v45, %v1351_v59 }
  0x43   : > { %v1137_v4 = vrot.slane %v2694_v35, 7  ;;  %v1549_v12 = vld [vmem:[%s2559_s9 + $0x2c] sm:$0x1]  ;;  %v1553_v13 = vld [vmem:[%s2559_s9 + $0x2d] sm:$0x1]  ;;  %v1778_v25 = vrot.slane %v2722_v57, 6  ;;  %v2764_v28 = vmax.f32 %v1124_v0, %v1128_v1  ;;  %v1777_v29 = vsel %vm273_vm0, %v1776_v62, %v2729_v60 }
  0x44   : > { %v1547_v21 = vld [vmem:[%s2559_s9 + $0xc] sm:$0x1]  ;;  %v1551_v24 = vld [vmem:[%s2559_s9 + $0xd] sm:$0x1]  ;;  %v715_v26 = vrot.slane %v2716_v48, 5  ;;  %v1139_v36 = vrot.slane %v2742_v3, 6 }
  0x45   : > { %v1550_v38 = vld [vmem:[%s2559_s9 + $0x3c] sm:$0x1]  ;;  %v1554_v40 = vld [vmem:[%s2559_s9 + $0x3d] sm:$0x1]  ;;  %vm323_vm8 = vcmask 130048   ;;  %vm406_vm9 = vcmask 1043456  }
  0x46   : > { %vm402_vm10 = vcmask 31744   ;;  %vm480_vm11 = vcmask 64512   ;;  %s3033_s5 = scalar_lea.vmem [#allocation5], %s2079_s25  ;;  %s2439_s7 = smov 8   ;;  %vm693_vm12 = vcmask 130112   ;;  %vm906_vm13 = vcmask 195712  }
  0x47   : > { %s2440_s8 = smov 24   ;;  %s2442_s10 = smov 40   ;;  %vm1119_vm14 = vcmask 261312   ;;  %vm1332_vm15 = vcmask 326912  }
  0x48   : > { %s2444_s11 = smov 56   ;;  %s1988_s13 = sshll.u32 %s3033_s5, 4  ;;  %s1989_s13 = int_to_ptr.vmem [resolvable:$true] %s1988_s13 }
  0x49   : > { %s1974_s24 = scalar_lea.sflag [#allocation4], %s2555_s6  ;;  %s2349_s26 = scalar_lea.vmem %s1989_s13, 128 }
  0x4a   : > { %p2350_p8 = scmp.ne.s32.totalorder %s1989_s13, %s2349_s26  ;;  %s2445_s25 = smov [#allocation5]  }
  0x4c   : > { %p2351_p12 = pnand %p2350_p8, %p2522_p9 }
  0x4e   : > { %p2352_p0 = pneg %p2351_p12 }
  0xa8   : > { %v284_v18 = vpop.permute.xlu0 %283 }
  0xa9   : > { %v285_v19 = vsel %vm282_vm3, %v284_v18, %v2588_v17  ;;  %v925_v18 = vsel %vm273_vm0, %v924_v56, %v2638_v54  ;;  %v1767_v56 = vld [vmem:[%s2559_s9 + $0x3f] sm:$0x1]  ;;  %s2441_s9 = smov 32  }
  0xaa   : > { %286 = vrot.lane.b32.xlu0 %v285_v19, %s2434_s27  ;;  %v928_v19 = vrot.slane %v2640_v55, 5  ;;  %v927_v49 = vsel %vm276_vm1, %v926_v7, %v925_v18  ;;  %v1354_v7 = vrot.slane %v2703_v44, 5  ;;  %v2753_v18 = vmax.f32 %v1763_v53, %v1767_v56 }
  0xab   : > { %v1141_v56 = vrot.slane %v2764_v28, 5 }
  0xac   : > { %v2746_v5 = vsel %vm279_vm2, %v928_v19, %v927_v49  ;;  %v714_v19 = vsel %vm276_vm1, %v713_v6, %v712_v58  ;;  %v2776_v6 = vmax.f32 %v1549_v12, %v1553_v13  ;;  %v2779_v45 = vsel %vm279_vm2, %v1354_v7, %v1353_v20 }
  0xad   : > { %v2788_v53 = vsel %vm279_vm2, %v715_v26, %v714_v19  ;;  %v2791_v58 = vmax.f32 %v1550_v38, %v1554_v40  ;;  %v239_v13 = vlaneseq }
  0xae   : > { %v1565_v62 = vrot.slane %v2776_v6, 6 }
 0x11c   : > { %v287_v15 = vpop.permute.xlu0 %286 }
 0x11d   : > { %v2672_v22 = vsel %vm282_vm3, %v287_v15, %v2588_v17  ;;  %v2688_v17 = vld [vmem:[%s3138_s1 + $0x8] sm:$0xff]  ;;  %v2751_v15 = vmax.f32 %v1548_v46, %v1552_v50  ;;  %v2781_v46 = vmax.f32 %v1547_v21, %v1551_v24  ;;  %v1779_v50 = vsel %vm276_vm1, %v1778_v25, %v1777_v29 }
 0x11e   : > { %293 = vrot.lane.b32.xlu0 %v2672_v22, %s2436_s12  ;;  %v290_v34 = vrot.slane %v2672_v22, 1  ;;  %2150 = vmatpush3.msra.mxu0 %v2688_v17  ;;  %v291_v61 = vrot.slane %v2672_v22, 2  ;;  %v292_v30 = vrot.slane %v2672_v22, 3  ;;  %v1780_v22 = vrot.slane %v2753_v18, 5 }
 0x11f   : > { %2151 = vmatprep.subr.mxu0 %v2435_v32  ;;  %v1563_v49 = vrot.slane %v2751_v15, 7  ;;  %v240_v24 = vand.u32 127, %v239_v13 }
 0x120   : > { %295 = vrot.lane.b32.xlu1 %v290_v34, %s2436_s12  ;;  %2152 = vmatpush3.msra.mxu0 %v2713_v47  ;;  %v1138_v34 = vsel %vm273_vm0, %v1137_v4, %v2740_v2  ;;  %v2800_v0 = vsel %vm279_vm2, %v1780_v22, %v1779_v50  ;;  %v1567_v4 = vrot.slane %v2791_v58, 5 }
 0x121   : > { %2168 = vmatprep.subr.mxu0 %v2435_v32  ;;  %v1140_v59 = vsel %vm276_vm1, %v1139_v36, %v1138_v34  ;;  %vm254_vm6 = vcmp.lt.s32.totalorder %v240_v24, 16 }
 0x122   : > { %505 = vrot.lane.b32.xlu0 %v2700_v39, %s2434_s27  ;;  %v2805_v1 = vsel %vm279_vm2, %v1141_v56, %v1140_v59 }
 0x124   : > { %297 = vrot.lane.b32.xlu1 %v291_v61, %s2436_s12  ;;  %v1564_v61 = vsel %vm273_vm0, %v1563_v49, %v2781_v46 }
 0x125   : > { %v1566_v7 = vsel %vm276_vm1, %v1565_v62, %v1564_v61 }
 0x126   : > { %931 = vrot.lane.b32.xlu0 %v2746_v5, %s2434_s27  ;;  %v2814_v12 = vsel %vm279_vm2, %v1567_v4, %v1566_v7 }
 0x128   : > { %299 = vrot.lane.b32.xlu1 %v292_v30, %s2436_s12  ;;  %v245_v30 = vand.u32 1, %v240_v24 }
 0x12a   : > { %1357 = vrot.lane.b32.xlu0 %v2779_v45, %s2434_s27  ;;  %vm253_vm5 = vcmp.eq.s32.totalorder %v245_v30, 0 }
 0x12b   : > { %vm2829_vm7 = vmand %vm253_vm5, %vm254_vm6 }
 0x12c   : > { %718 = vrot.lane.b32.xlu1 %v2788_v53, %s2434_s27 }
 0x12e   : > { %1783 = vrot.lane.b32.xlu0 %v2800_v0, %s2434_s27 }
 0x130   : > { %1144 = vrot.lane.b32.xlu1 %v2805_v1, %s2434_s27 }
 0x134   : > { %1570 = vrot.lane.b32.xlu1 %v2814_v12, %s2434_s27 }
 0x190   : > { %v294_v20 = vpop.permute.xlu0 %293 }
 0x192   : > { %v296_v21 = vpop.permute.xlu1 %295 }
 0x193   : > { %v306_v19 = vmax.f32 %v2575_v9, %v296_v21  ;;  %v305_v9 = vmax.f32 %v2573_v8, %v294_v20 }
 0x194   : > { %v506_v25 = vpop.permute.xlu0 %505 }
 0x195   : > { %v507_v26 = vsel %vm282_vm3, %v506_v25, %v2700_v39  ;;  %v315_v38 = vrot.slane %v306_v19, 7 }
 0x196   : > { %508 = vrot.lane.b32.xlu1 %v507_v26, %s2434_s27  ;;  %v298_v29 = vpop.permute.xlu1 %297 }
 0x197   : > { %v307_v34 = vmax.f32 %v2577_v10, %v298_v29  ;;  %v316_v59 = vsel %vm273_vm0, %v315_v38, %v305_v9 }
 0x198   : > { %v932_v36 = vpop.permute.xlu0 %931 }
 0x199   : > { %v933_v40 = vsel %vm282_vm3, %v932_v36, %v2746_v5  ;;  %v317_v49 = vrot.slane %v307_v34, 6 }
 0x19a   : > { %v300_v22 = vpop.permute.xlu1 %299  ;;  %934 = vrot.lane.b32.xlu1 %v933_v40, %s2434_s27 }
 0x19b   : > { %v308_v50 = vmax.f32 %v2579_v11, %v300_v22  ;;  %v318_v4 = vsel %vm276_vm1, %v317_v49, %v316_v59 }
 0x19c   : > { %v1358_v56 = vpop.permute.xlu0 %1357 }
 0x19d   : > { %v319_v62 = vrot.slane %v308_v50, 5  ;;  %v1359_v61 = vsel %vm282_vm3, %v1358_v56, %v2779_v45 }
 0x19e   : > { %v719_v7 = vpop.permute.xlu1 %718  ;;  %1360 = vrot.lane.b32.xlu1 %v1359_v61, %s2434_s27 }
 0x19f   : > { %v720_v8 = vsel %vm282_vm3, %v719_v7, %v2788_v53  ;;  %v320_v11 = vsel %vm279_vm2, %v319_v62, %v318_v4 }
 0x1a0   : > { %721 = vrot.lane.b32.xlu0 %v720_v8, %s2434_s27  ;;  %v322_v13 = vsel %vm2829_vm7, %v320_v11, 0.0  ;;  %v1784_v20 = vpop.permute.xlu0 %1783 }
 0x1a1   : > { %2154 = vmatmul.mubr.msk.f32.vlgmr.msra.gmra.mxu0 %vm323_vm8, %v322_v13  ;;  %v1785_v21 = vsel %vm282_vm3, %v1784_v20, %v2800_v0 }
 0x1a2   : > { %v1145_v24 = vpop.permute.xlu1 %1144  ;;  %1786 = vrot.lane.b32.xlu1 %v1785_v21, %s2434_s27  ;;  %2170 = vmatprep.mubr.msk.f32.mxu0 %vm2437_vm4, %v2435_v32 }
 0x1a3   : > { %v1146_v25 = vsel %vm282_vm3, %v1145_v24, %v2805_v1 }
 0x1a4   : > { %1147 = vrot.lane.b32.xlu0 %v1146_v25, %s2434_s27 }
 0x1a6   : > { %v1571_v19 = vpop.permute.xlu1 %1570 }
 0x1a7   : > { %v1572_v26 = vsel %vm282_vm3, %v1571_v19, %v2814_v12 }
 0x1a8   : > { %1573 = vrot.lane.b32.xlu0 %v1572_v26, %s2434_s27 }
 0x208   : > { %v509_v29 = vpop.permute.xlu1 %508 }
 0x209   : > { %v510_v30 = vsel %vm282_vm3, %v509_v29, %v2700_v39 }
 0x20a   : > { %v513_v34 = vrot.slane %v510_v30, 2  ;;  %515 = vrot.lane.b32.xlu0 %v510_v30, %s2436_s12  ;;  %v514_v36 = vrot.slane %v510_v30, 3  ;;  %v512_v7 = vrot.slane %v510_v30, 1 }
 0x20c   : > { %519 = vrot.lane.b32.xlu1 %v513_v34, %s2436_s12  ;;  %v935_v40 = vpop.permute.xlu1 %934 }
 0x20d   : > { %v936_v9 = vsel %vm282_vm3, %v935_v40, %v2746_v5  ;;  %v2903_v40 = vld [vmem:[%s3139_s2] sm:$0xff] }
 0x20e   : > { %v940_v61 = vrot.slane %v936_v9, 3 }
 0x210   : > { %521 = vrot.lane.b32.xlu1 %v514_v36, %s2436_s12  ;;  %v1361_v59 = vpop.permute.xlu1 %1360  ;;  %v2438_v36 = vmov 0  }
 0x211   : > { %v1362_v62 = vsel %vm282_vm3, %v1361_v59, %v2779_v45  ;;  %2320 = vset.pattern.permute.xlu0 %v2438_v36 }
 0x212   : > { %v722_v38 = vpop.permute.xlu0 %721  ;;  %v1365_v11 = vrot.slane %v1362_v62, 2  ;;  %v1366_v13 = vrot.slane %v1362_v62, 3  ;;  %v1364_v25 = vrot.slane %v1362_v62, 1 }
 0x213   : > { %v723_v49 = vsel %vm282_vm3, %v722_v38, %v2788_v53  ;;  %v939_v53 = vrot.slane %v936_v9, 2 }
 0x214   : > { %728 = vrot.lane.b32.xlu0 %v723_v49, %s2436_s12  ;;  %v726_v22 = vrot.slane %v723_v49, 2  ;;  %v727_v50 = vrot.slane %v723_v49, 3  ;;  %v725_v8 = vrot.slane %v723_v49, 1  ;;  %v1787_v24 = vpop.permute.xlu1 %1786 }
 0x215   : > { %v1788_v19 = vsel %vm282_vm3, %v1787_v24, %v2800_v0  ;;  %v238_v0 = vld [vmem:[%s3140_s3] sm:$0xff] }
 0x216   : > { %732 = vrot.lane.b32.xlu1 %v726_v22, %s2436_s12  ;;  %v1148_v39 = vpop.permute.xlu0 %1147  ;;  %v1791_v30 = vrot.slane %v1788_v19, 2  ;;  %v1790_v34 = vrot.slane %v1788_v19, 1  ;;  %v1792_v38 = vrot.slane %v1788_v19, 3 }
 0x217   : > { %v1149_v56 = vsel %vm282_vm3, %v1148_v39, %v2805_v1 }
 0x218   : > { %941 = vrot.lane.b32.xlu0 %v936_v9, %s2436_s12  ;;  %v1152_v1 = vrot.slane %v1149_v56, 2  ;;  %v1153_v45 = vrot.slane %v1149_v56, 3  ;;  %v1151_v20 = vrot.slane %v1149_v56, 1 }
 0x21a   : > { %734 = vrot.lane.b32.xlu1 %v727_v50, %s2436_s12  ;;  %v1574_v5 = vpop.permute.xlu0 %1573 }
 0x21b   : > { %v1575_v4 = vsel %vm282_vm3, %v1574_v5, %v2814_v12  ;;  %v938_v12 = vrot.slane %v936_v9, 1 }
 0x21c   : > { %1154 = vrot.lane.b32.xlu0 %v1149_v56, %s2436_s12  ;;  %v1578_v21 = vrot.slane %v1575_v4, 2  ;;  %v1579_v26 = vrot.slane %v1575_v4, 3  ;;  %v1577_v29 = vrot.slane %v1575_v4, 1 }
 0x21e   : > { %945 = vrot.lane.b32.xlu1 %v939_v53, %s2436_s12 }
 0x220   : > { %1367 = vrot.lane.b32.xlu0 %v1362_v62, %s2436_s12 }
 0x222   : > { %947 = vrot.lane.b32.xlu1 %v940_v61, %s2436_s12 }
 0x224   : > { %1580 = vrot.lane.b32.xlu0 %v1575_v4, %s2436_s12 }
 0x226   : > { %1158 = vrot.lane.b32.xlu1 %v1152_v1, %s2436_s12 }
 0x228   : > { %517 = vrot.lane.b32.xlu0 %v512_v7, %s2436_s12 }
 0x22a   : > { %1160 = vrot.lane.b32.xlu1 %v1153_v45, %s2436_s12 }
 0x22c   : > { %730 = vrot.lane.b32.xlu0 %v725_v8, %s2436_s12 }
 0x22e   : > { %1371 = vrot.lane.b32.xlu1 %v1365_v11, %s2436_s12 }
 0x230   : > { %943 = vrot.lane.b32.xlu0 %v938_v12, %s2436_s12 }
 0x232   : > { %1373 = vrot.lane.b32.xlu1 %v1366_v13, %s2436_s12 }
 0x234   : > { %1156 = vrot.lane.b32.xlu0 %v1151_v20, %s2436_s12 }
 0x236   : > { %1584 = vrot.lane.b32.xlu1 %v1578_v21, %s2436_s12 }
 0x238   : > { %1369 = vrot.lane.b32.xlu0 %v1364_v25, %s2436_s12 }
 0x23a   : > { %1586 = vrot.lane.b32.xlu1 %v1579_v26, %s2436_s12 }
 0x23c   : > { %1582 = vrot.lane.b32.xlu0 %v1577_v29, %s2436_s12 }
 0x23e   : > { %1797 = vrot.lane.b32.xlu1 %v1791_v30, %s2436_s12 }
 0x240   : > { %1795 = vrot.lane.b32.xlu0 %v1790_v34, %s2436_s12 }
 0x242   : > { %1799 = vrot.lane.b32.xlu1 %v1792_v38, %s2436_s12 }
 0x244   : > { %1793 = vrot.lane.b32.xlu0 %v1788_v19, %s2436_s12  ;;  %s2105_s12 = sshll.u32 %s2421_s18, 7 }
 0x245   : > { %s3094_s22 = scalar_lea.hbm %s3141_s4, %s2105_s12 }
 0x248   : > { %399 = vperm.xlu0 %2320, %v238_v0  }
 0x261   : > { %v393_v49 = vpop.f32.mrf.mxu0 }
 0x262   : > { %2157 = vmatpush3.msk.msra.mxu1 %vm406_vm9, %v393_v49 }
 0x263   : > { %v2155_v22 = vpop.f32.mrf.mxu0  ;;  %2159 = vmatmul.mubr.msk.f32.vlgmr.msra.gmra.mxu1 %vm402_vm10, %v2903_v40  ;;  %2161 = vmatprep.subr.mxu1 %v2435_v32 }
 0x264   : > { %2162 = vmatpush3.msra.mxu1 %v2688_v17  ;;  %2165 = vmatprep.mubr.msk.f32.mxu1 %vm2437_vm4, %v2435_v32 }
 0x265   : > { %2163 = vmatprep.subr.mxu1 %v2435_v32 }
 0x266   : > { %2164 = vmatpush3.msra.mxu1 %v2713_v47 }
 0x267   : > { %2173 = vmatprep.subr.mxu1 %v2435_v32 }
 0x27c   : > { %v516_v39 = vpop.permute.xlu0 %515 }
 0x27d   : > { %v527_v21 = vmax.f32 %v2614_v37, %v516_v39 }
 0x27e   : > { %v520_v9 = vpop.permute.xlu1 %519 }
 0x27f   : > { %v529_v8 = vmax.f32 %v2609_v33, %v520_v9 }
 0x281   : > { %v537_v25 = vrot.slane %v529_v8, 6 }
 0x282   : > { %v522_v50 = vpop.permute.xlu1 %521 }
 0x283   : > { %v530_v12 = vmax.f32 %v2621_v42, %v522_v50 }
 0x285   : > { %v539_v29 = vrot.slane %v530_v12, 5 }
 0x286   : > { %v729_v56 = vpop.permute.xlu0 %728 }
 0x288   : > { %v733_v59 = vpop.permute.xlu1 %732 }
 0x289   : > { %v742_v19 = vmax.f32 %v2632_v51, %v733_v59 }
 0x28a   : > { %v942_v53 = vpop.permute.xlu0 %941 }
 0x28b   : > { %v750_v0 = vrot.slane %v742_v19, 6 }
 0x28c   : > { %v735_v62 = vpop.permute.xlu1 %734 }
 0x28d   : > { %v743_v30 = vmax.f32 %v2716_v48, %v735_v62 }
 0x28e   : > { %v2915_v5 = vpop.permute.xlu0 %1154 }
 0x28f   : > { %v752_v48 = vrot.slane %v743_v30, 5 }
 0x290   : > { %v946_v61 = vpop.permute.xlu1 %945 }
 0x291   : > { %v955_v49 = vmax.f32 %v2634_v52, %v946_v61  ;;  %v953_v52 = vmax.f32 %v2638_v54, %v942_v53 }
 0x292   : > { %v2917_v4 = vpop.permute.xlu0 %1367 }
 0x293   : > { %v963_v59 = vrot.slane %v955_v49, 6 }
 0x294   : > { %v948_v1 = vpop.permute.xlu1 %947 }
 0x295   : > { %v956_v9 = vmax.f32 %v2640_v55, %v948_v1 }
 0x296   : > { %v2919_v7 = vpop.permute.xlu0 %1580 }
 0x297   : > { %v965_v1 = vrot.slane %v956_v9, 5 }
 0x298   : > { %v1159_v45 = vpop.permute.xlu1 %1158 }
 0x29a   : > { %v518_v11 = vpop.permute.xlu0 %517 }
 0x29b   : > { %v528_v13 = vmax.f32 %v2598_v23, %v518_v11  ;;  %v740_v23 = vmax.f32 %v2663_v16, %v729_v56 }
 0x29c   : > { %v1161_v20 = vpop.permute.xlu1 %1160 }
 0x29d   : > { %v535_v24 = vrot.slane %v528_v13, 7  ;;  %v1169_v8 = vmax.f32 %v2764_v28, %v1161_v20 }
 0x29e   : > { %v731_v26 = vpop.permute.xlu0 %730 }
 0x29f   : > { %v536_v34 = vsel %vm273_vm0, %v535_v24, %v527_v21  ;;  %v741_v33 = vmax.f32 %v2623_v43, %v731_v26  ;;  %v1178_v24 = vrot.slane %v1169_v8, 5  ;;  %v1379_v26 = vmax.f32 %v2677_v27, %v2917_v4 }
 0x2a0   : > { %v538_v36 = vsel %vm276_vm1, %v537_v25, %v536_v34  ;;  %v1372_v42 = vpop.permute.xlu1 %1371 }
 0x2a1   : > { %v748_v38 = vrot.slane %v741_v33, 7  ;;  %v540_v37 = vsel %vm279_vm2, %v539_v29, %v538_v36  ;;  %v1381_v13 = vmax.f32 %v2661_v14, %v1372_v42 }
 0x2a2   : > { %v944_v51 = vpop.permute.xlu0 %943  ;;  %v542_v22 = vsel %vm2829_vm7, %v540_v37, 0.0 }
 0x2a3   : > { %v749_v43 = vsel %vm273_vm0, %v748_v38, %v740_v23  ;;  %v954_v39 = vmax.f32 %v2619_v41, %v944_v51  ;;  %2166 = vmatmul.mubr.msk.f32.vlgmr.msra.gmra.mxu1 %vm323_vm8, %v542_v22  ;;  %v1168_v41 = vmax.f32 %v2742_v3, %v1159_v45  ;;  %v1166_v45 = vmax.f32 %v2740_v2, %v2915_v5 }
 0x2a4   : > { %v751_v16 = vsel %vm276_vm1, %v750_v0, %v749_v43  ;;  %v1374_v50 = vpop.permute.xlu1 %1373  ;;  %2174 = vmatpush3.msra.mxu1 %v2688_v17  ;;  %2177 = vmatprep.mubr.msk.f32.mxu1 %vm2437_vm4, %v2435_v32  ;;  %v1389_v29 = vrot.slane %v1381_v13, 6  ;;  %v1592_v38 = vmax.f32 %v2781_v46, %v2919_v7 }
 0x2a5   : > { %v961_v56 = vrot.slane %v954_v39, 7  ;;  %2175 = vmatprep.subr.mxu1 %v2435_v32  ;;  %v753_v55 = vsel %vm279_vm2, %v752_v48, %v751_v16  ;;  %v1176_v12 = vrot.slane %v1168_v41, 6  ;;  %v1382_v25 = vmax.f32 %v2703_v44, %v1374_v50 }
 0x2a6   : > { %v1157_v62 = vpop.permute.xlu0 %1156  ;;  %2176 = vmatpush3.msra.mxu1 %v2713_v47  ;;  %v755_v61 = vsel %vm2829_vm7, %v753_v55, 0.0 }
 0x2a7   : > { %v962_v11 = vsel %vm273_vm0, %v961_v56, %v953_v52  ;;  %v1167_v54 = vmax.f32 %v2694_v35, %v1157_v62  ;;  %2178 = vmatmul.mubr.msk.f32.vlgmr.msra.gmra.mxu1 %vm323_vm8, %v755_v61  ;;  %2185 = vmatprep.subr.mxu1 %v2435_v32  ;;  %v1391_v36 = vrot.slane %v1382_v25, 5 }
 0x2a8   : > { %v964_v53 = vsel %vm276_vm1, %v963_v59, %v962_v11  ;;  %v1585_v3 = vpop.permute.xlu1 %1584  ;;  %2186 = vmatpush3.msra.mxu1 %v2688_v17  ;;  %2189 = vmatprep.mubr.msk.f32.mxu1 %vm2437_vm4, %v2435_v32 }
 0x2a9   : > { %v1174_v28 = vrot.slane %v1167_v54, 7  ;;  %2187 = vmatprep.subr.mxu1 %v2435_v32  ;;  %v966_v35 = vsel %vm279_vm2, %v965_v1, %v964_v53  ;;  %v1594_v30 = vmax.f32 %v2776_v6, %v1585_v3 }
 0x2aa   : > { %v1370_v20 = vpop.permute.xlu0 %1369  ;;  %2188 = vmatpush3.msra.mxu1 %v2713_v47  ;;  %v968_v21 = vsel %vm2829_vm7, %v966_v35, 0.0 }
 0x2ab   : > { %v1175_v19 = vsel %vm273_vm0, %v1174_v28, %v1166_v45  ;;  %v1380_v2 = vmax.f32 %v2649_v63, %v1370_v20  ;;  %2190 = vmatmul.mubr.msk.f32.vlgmr.msra.gmra.mxu1 %vm323_vm8, %v968_v21  ;;  %2197 = vmatprep.subr.mxu1 %v2435_v32 }
 0x2ac   : > { %v1177_v5 = vsel %vm276_vm1, %v1176_v12, %v1175_v19  ;;  %v1587_v14 = vpop.permute.xlu1 %1586  ;;  %2198 = vmatpush3.msra.mxu1 %v2688_v17  ;;  %2201 = vmatprep.mubr.msk.f32.mxu1 %vm2437_vm4, %v2435_v32 }
 0x2ad   : > { %v1387_v44 = vrot.slane %v1380_v2, 7  ;;  %2199 = vmatprep.subr.mxu1 %v2435_v32  ;;  %v1179_v63 = vsel %vm279_vm2, %v1178_v24, %v1177_v5  ;;  %v1595_v23 = vmax.f32 %v2791_v58, %v1587_v14  ;;  %v1602_v58 = vrot.slane %v1594_v30, 6 }
 0x2ae   : > { %v1583_v34 = vpop.permute.xlu0 %1582  ;;  %2200 = vmatpush3.msra.mxu1 %v2713_v47  ;;  %v1181_v33 = vsel %vm2829_vm7, %v1179_v63, 0.0 }
 0x2af   : > { %v1388_v42 = vsel %vm273_vm0, %v1387_v44, %v1379_v26  ;;  %v1593_v27 = vmax.f32 %v2751_v15, %v1583_v34  ;;  %2202 = vmatmul.mubr.msk.f32.vlgmr.msra.gmra.mxu1 %vm323_vm8, %v1181_v33  ;;  %2209 = vmatprep.subr.mxu1 %v2435_v32  ;;  %v1604_v51 = vrot.slane %v1595_v23, 5 }
 0x2b0   : > { %v1390_v4 = vsel %vm276_vm1, %v1389_v29, %v1388_v42  ;;  %v1798_v6 = vpop.permute.xlu1 %1797  ;;  %2210 = vmatpush3.msra.mxu1 %v2688_v17  ;;  %2213 = vmatprep.mubr.msk.f32.mxu1 %vm2437_vm4, %v2435_v32 }
 0x2b1   : > { %v1600_v37 = vrot.slane %v1593_v27, 7  ;;  %2211 = vmatprep.subr.mxu1 %v2435_v32  ;;  %v1392_v15 = vsel %vm279_vm2, %v1391_v36, %v1390_v4  ;;  %v1807_v7 = vmax.f32 %v2722_v57, %v1798_v6 }
 0x2b2   : > { %v1796_v0 = vpop.permute.xlu0 %1795  ;;  %2212 = vmatpush3.msra.mxu1 %v2713_v47  ;;  %v1394_v49 = vsel %vm2829_vm7, %v1392_v15, 0.0 }
 0x2b3   : > { %v1601_v22 = vsel %vm273_vm0, %v1600_v37, %v1592_v38  ;;  %v1806_v48 = vmax.f32 %v2682_v31, %v1796_v0  ;;  %2214 = vmatmul.mubr.msk.f32.vlgmr.msra.gmra.mxu1 %vm323_vm8, %v1394_v49  ;;  %2221 = vmatprep.subr.mxu1 %v2435_v32  ;;  %v1815_v52 = vrot.slane %v1807_v7, 6 }
 0x2b4   : > { %v1603_v46 = vsel %vm276_vm1, %v1602_v58, %v1601_v22  ;;  %v1800_v9 = vpop.permute.xlu1 %1799  ;;  %2222 = vmatpush3.msra.mxu1 %v2688_v17  ;;  %2225 = vmatprep.mubr.msk.f32.mxu1 %vm2437_vm4, %v2435_v32 }
 0x2b5   : > { %v1808_v43 = vmax.f32 %v2753_v18, %v1800_v9  ;;  %2223 = vmatprep.subr.mxu1 %v2435_v32  ;;  %v1605_v31 = vsel %vm279_vm2, %v1604_v51, %v1603_v46  ;;  %v1813_v57 = vrot.slane %v1806_v48, 7 }
 0x2b6   : > { %v1794_v39 = vpop.permute.xlu0 %1793  ;;  %2224 = vmatpush3.msra.mxu1 %v2713_v47  ;;  %v1607_v16 = vsel %vm2829_vm7, %v1605_v31, 0.0 }
 0x2b7   : > { %v1805_v50 = vmax.f32 %v2729_v60, %v1794_v39  ;;  %2226 = vmatmul.mubr.msk.f32.vlgmr.msra.gmra.mxu1 %vm323_vm8, %v1607_v16  ;;  %2233 = vmatprep.subr.mxu1 %v2435_v32  ;;  %v1817_v18 = vrot.slane %v1808_v43, 5 }
 0x2b8   : > { %2234 = vmatpush3.msra.mxu1 %v2688_v17  ;;  %2237 = vmatprep.mubr.msk.f32.mxu1 %vm2437_vm4, %v2435_v32 }
 0x2b9   : > { %v1814_v56 = vsel %vm273_vm0, %v1813_v57, %v1805_v50  ;;  %2235 = vmatprep.subr.mxu1 %v2435_v32  ;;  %vm1545_vm0 = vcmask 392512  }
 0x2ba   : > { %v1816_v55 = vsel %vm276_vm1, %v1815_v52, %v1814_v56  ;;  %2236 = vmatpush3.msra.mxu1 %v2713_v47  ;;  %vm1758_vm1 = vcmask 458112  }
 0x2bb   : > { %v1818_v60 = vsel %vm279_vm2, %v1817_v18, %v1816_v55  ;;  %vm1971_vm2 = vcmask 523712  }
 0x2bc   : > { %v1820_v59 = vsel %vm2829_vm7, %v1818_v60, 0.0 }
 0x2bd   : > { %2238 = vmatmul.mubr.msk.f32.vlgmr.msra.gmra.mxu1 %vm323_vm8, %v1820_v59 }
 0x2c3   : > { %v3030_v17 = vpop.permute.xlu0 %399 }
 0x323   : > { %v476_v41 = vpop.f32.mrf.mxu1 }
 0x324   : > { %v477_v62 = vadd.f32 %v476_v41, %v3030_v17 }
 0x325   : > { %v2160_v61 = vpop.f32.mrf.mxu1 }
 0x326   : > { %481 = vst.msk [vmem:[%s3033_s5] sm:$0xff] %vm480_vm11, %v477_v62 }
 0x363   : > { %v612_v47 = vpop.f32.mrf.mxu1 }
 0x364   : > { %2169 = vmatpush3.msk.msra.mxu0 %vm406_vm9, %v612_v47 }
 0x365   : > { %v2167_v1 = vpop.f32.mrf.mxu1  ;;  %2171 = vmatmul.mubr.msk.f32.vlgmr.msra.gmra.mxu0 %vm402_vm10, %v2903_v40  ;;  %2180 = vmatprep.subr.mxu0 %v2435_v32 }
 0x366   : > { %2182 = vmatprep.mubr.msk.f32.mxu0 %vm2437_vm4, %v2435_v32 }
 0x367   : > { %v825_v10 = vpop.f32.mrf.mxu1 }
 0x368   : > { %2181 = vmatpush3.msk.msra.mxu0 %vm406_vm9, %v825_v10 }
 0x369   : > { %v2179_v8 = vpop.f32.mrf.mxu1  ;;  %2183 = vmatmul.mubr.msk.f32.vlgmr.msra.gmra.mxu0 %vm402_vm10, %v2903_v40  ;;  %2192 = vmatprep.subr.mxu0 %v2435_v32 }
 0x36a   : > { %2194 = vmatprep.mubr.msk.f32.mxu0 %vm2437_vm4, %v2435_v32 }
 0x36b   : > { %v1038_v11 = vpop.f32.mrf.mxu1 }
 0x36c   : > { %2193 = vmatpush3.msk.msra.mxu0 %vm406_vm9, %v1038_v11 }
 0x36d   : > { %v2191_v54 = vpop.f32.mrf.mxu1  ;;  %2195 = vmatmul.mubr.msk.f32.vlgmr.msra.gmra.mxu0 %vm402_vm10, %v2903_v40  ;;  %2204 = vmatprep.subr.mxu0 %v2435_v32 }
 0x36e   : > { %2206 = vmatprep.mubr.msk.f32.mxu0 %vm2437_vm4, %v2435_v32 }
 0x36f   : > { %v1251_v53 = vpop.f32.mrf.mxu1 }
 0x370   : > { %2205 = vmatpush3.msk.msra.mxu0 %vm406_vm9, %v1251_v53 }
 0x371   : > { %v2203_v3 = vpop.f32.mrf.mxu1  ;;  %2207 = vmatmul.mubr.msk.f32.vlgmr.msra.gmra.mxu0 %vm402_vm10, %v2903_v40  ;;  %2216 = vmatprep.subr.mxu0 %v2435_v32 }
 0x372   : > { %2218 = vmatprep.mubr.msk.f32.mxu0 %vm2437_vm4, %v2435_v32 }
 0x373   : > { %v1464_v45 = vpop.f32.mrf.mxu1 }
 0x374   : > { %2217 = vmatpush3.msk.msra.mxu0 %vm406_vm9, %v1464_v45 }
 0x375   : > { %v2215_v28 = vpop.f32.mrf.mxu1  ;;  %2219 = vmatmul.mubr.msk.f32.vlgmr.msra.gmra.mxu0 %vm402_vm10, %v2903_v40  ;;  %2228 = vmatprep.subr.mxu0 %v2435_v32 }
 0x376   : > { %2230 = vmatprep.mubr.msk.f32.mxu0 %vm2437_vm4, %v2435_v32 }
 0x377   : > { %v1677_v35 = vpop.f32.mrf.mxu1 }
 0x378   : > { %2229 = vmatpush3.msk.msra.mxu0 %vm406_vm9, %v1677_v35 }
 0x379   : > { %v2227_v12 = vpop.f32.mrf.mxu1  ;;  %2231 = vmatmul.mubr.msk.f32.vlgmr.msra.gmra.mxu0 %vm402_vm10, %v2903_v40  ;;  %2240 = vmatprep.subr.mxu0 %v2435_v32 }
 0x37a   : > { %2242 = vmatprep.mubr.msk.f32.mxu0 %vm2437_vm4, %v2435_v32 }
 0x37d   : > { %v1890_v13 = vpop.f32.mrf.mxu1 }
 0x37e   : > { %2241 = vmatpush3.msk.msra.mxu0 %vm406_vm9, %v1890_v13 }
 0x37f   : > { %v2239_v20 = vpop.f32.mrf.mxu1  ;;  %2243 = vmatmul.mubr.msk.f32.vlgmr.msra.gmra.mxu0 %vm402_vm10, %v2903_v40 }
 0x425   : > { %v685_v21 = vpop.f32.mrf.mxu0 }
 0x426   : > { %v686_v24 = vadd.f32 %v685_v21, %v3030_v17 }
 0x427   : > { %v2172_v25 = vpop.f32.mrf.mxu0 }
 0x428   : > { %690 = vrot.lane.b32.xlu1 %v686_v24, %s2439_s7  ;;  %s2353_s7 = sshll.u32 %s2445_s25, 4  ;;  %s2354_s7 = int_to_ptr.vmem [resolvable:$false] %s2353_s7 }
 0x429   : > { %v898_v19 = vpop.f32.mrf.mxu0  ;;  %s2355_s18 = scalar_lea.vmem %s2354_s7, 256  ;;  %p2356_p1 = scmp.lt.s32.totalorder %s1989_s13, %s2354_s7 }
 0x42a   : > { %v899_v2 = vadd.f32 %v898_v19, %v3030_v17  ;;  %p2357_p3 = scmp.lt.s32.totalorder %s2355_s18, %s2349_s26 }
 0x42b   : > { %v2184_v5 = vpop.f32.mrf.mxu0 }
 0x42c   : > { %903 = vrot.lane.b32.xlu1 %v899_v2, %s2434_s27  ;;  %s2443_s27 = smov 48   ;;  %p2358_p5 = por %p2357_p3, %p2356_p1 }
 0x42d   : > { %v1111_v32 = vpop.f32.mrf.mxu0 }
 0x42e   : > { %v1112_v14 = vadd.f32 %v1111_v32, %v3030_v17  ;;  %p2359_p6 = pnand %p2358_p5, %p2352_p0 }
 0x42f   : > { %v2196_v26 = vpop.f32.mrf.mxu0 }
 0x430   : > { %1116 = vrot.lane.b32.xlu0 %v1112_v14, %s2440_s8 }
 0x431   : > { %v1324_v44 = vpop.f32.mrf.mxu0 }
 0x432   : > { %v1325_v40 = vadd.f32 %v1324_v44, %v3030_v17 }
 0x433   : > { %v2208_v63 = vpop.f32.mrf.mxu0 }
 0x434   : > { %1329 = vrot.lane.b32.xlu1 %v1325_v40, %s2441_s9 }
 0x435   : > { %v1537_v29 = vpop.f32.mrf.mxu0 }
 0x436   : > { %v1538_v30 = vadd.f32 %v1537_v29, %v3030_v17 }
 0x437   : > { %v2220_v34 = vpop.f32.mrf.mxu0 }
 0x438   : > { %1542 = vrot.lane.b32.xlu0 %v1538_v30, %s2442_s10 }
 0x439   : > { %v1750_v33 = vpop.f32.mrf.mxu0 }
 0x43a   : > { %v1751_v36 = vadd.f32 %v1750_v33, %v3030_v17 }
 0x43b   : > { %v2232_v42 = vpop.f32.mrf.mxu0 }
 0x43c   : > { %1755 = vrot.lane.b32.xlu1 %v1751_v36, %s2443_s27 }
 0x43f   : > { %v1963_v23 = vpop.f32.mrf.mxu0 }
 0x440   : > { %v1964_v27 = vadd.f32 %v1963_v23, %v3030_v17 }
 0x441   : > { %v2244_v4 = vpop.f32.mrf.mxu0 }
 0x442   : > { %1968 = vrot.lane.b32.xlu0 %v1964_v27, %s2444_s11 }
 0x49a   : > { %v691_v6 = vpop.permute.xlu1 %690 }
 0x49b   : > { %694 = vst.msk [vmem:[%s3033_s5] sm:$0xff] %vm693_vm12, %v691_v6 }
 0x49e   : > { %v904_v38 = vpop.permute.xlu1 %903 }
 0x49f   : > { %907 = vst.msk [vmem:[%s3033_s5] sm:$0xff] %vm906_vm13, %v904_v38 }
 0x4a2   : > { %v1117_v37 = vpop.permute.xlu0 %1116 }
 0x4a3   : > { %1120 = vst.msk [vmem:[%s3033_s5] sm:$0xff] %vm1119_vm14, %v1117_v37 }
 0x4a6   : > { %v1330_v15 = vpop.permute.xlu1 %1329 }
 0x4a7   : > { %1333 = vst.msk [vmem:[%s3033_s5] sm:$0xff] %vm1332_vm15, %v1330_v15 }
 0x4aa   : > { %v1543_v58 = vpop.permute.xlu0 %1542 }
 0x4ab   : > { %1546 = vst.msk [vmem:[%s3033_s5] sm:$0xff] %vm1545_vm0, %v1543_v58 }
 0x4ae   : > { %v1756_v0 = vpop.permute.xlu1 %1755 }
 0x4af   : > { %1759 = vst.msk [vmem:[%s3033_s5] sm:$0xff] %vm1758_vm1, %v1756_v0 }
 0x4b4   : > { %v1969_v49 = vpop.permute.xlu0 %1968 }
 0x4b5   : > { %1972 = vst.msk [vmem:[%s3033_s5] sm:$0xff] %vm1971_vm2, %v1969_v49 }
 0x4b6   : > { %2362 = shalt.err (!%p2359_p6)
}
 0x4b7   : > { %s2363_s5 = scalar_lea.hbm %s3094_s22, 128  ;;  %s2367_s9 = scalar_lea.hbm %s3141_s4, 256 }
 0x4b8   : > { %p2364_p7 = scmp.ne.s32.totalorder %s3094_s22, %s2363_s5  ;;  %p2368_p13 = scmp.lt.s32.totalorder %s3094_s22, %s3141_s4 }
 0x4b9   : > { %p2369_p2 = scmp.lt.s32.totalorder %s2367_s9, %s2363_s5 }
 0x4ba   : > { %p2365_p10 = pnand %p2364_p7, %p2522_p9 }
 0x4bb   : > { %p2370_p8 = por %p2369_p2, %p2368_p13 }
 0x4bc   : > { %p2366_p4 = pneg %p2365_p10 }
 0x4be   : > { %p2371_p12 = pnand %p2370_p8, %p2366_p4 }
 0x4c0   : > { %2374 = shalt.err (!%p2371_p12)
}
 0x4c1   : > { %2247 = dma.vmem_to_hbm [thread:$0]  (%p2522_p9), %s1989_s13, 128, %s3094_s22, %s1974_s24  }
 0x4c2 PF: > { %s2000_s11 = sand.u32 1, %s2409_s15   ;;  %p3149_p0 = scmp.ge.s32.totalorder %s2429_s20, 2 }
 0x4c3   : > { %s2001_s12 = scalar_lea.sflag [#allocation4], %s2000_s11 }
 0x4c4   : > { %p2254_p1 = pnand %p3149_p0, %p2529_p11 }
 0x4c6   : > { %p2255_p3 = pneg %p2254_p1 }
 0x4c8   : > { %2404 = dma.done.wait (%p2255_p3), %s2001_s12, 128  }
 0x4c9   : > { %2406 = vsyncadd (%p2255_p3), %s2001_s12, 4294967168  ;;  %s20_s20 = sadd.s32 1, %s2429_s20   ;;  %s3150_s15 = smov %s2413_s16 }
 0x4ca   : > { %p17_p5 = scmp.ge.s32.totalorder %s20_s20, 4   ;;  %s3151_s16 = smov %s2417_s17 }
 0x4cb   : > { %s3152_s17 = smov %s2527_s29  ;;  %s3153_s18 = smov %s2425_s19 }
 0x4cc   : > { %s3154_s19 = smov %s3156_s23  ;;  %19 = sbr.rel (!%p17_p5) target bundleno = 6 (0x6), region = 81 }
 0x4d1   :  { %2006 = vsyncpa [#allocation3], 1 }
 0x4d2   :  { %2008 = vsyncpa [#allocation3 + $0x1], 1 }
 0x4d3   :  { %2009 = vsyncpa [#allocation4], 1 }
 0x4d4   :  { %2011 = vsyncpa [#allocation4 + $0x1], 1 }

</bundles_post_ra>
